<compile_context>
chip_gen: v7x
topology: tpu7x:2x2x1
jax: 0.10.0
libtpu: 0.0.40
codegen_flags: <defaults>
</compile_context>

<pallas_src>
import jax
import jax.numpy as jnp
from jax.experimental import pallas as pl
from jax.experimental.pallas import tpu as pltpu


# ----------------------------------------------------------------------------
# Fused Pallas kernel (all LSTM layers + final Linear)
# ----------------------------------------------------------------------------
def _make_fused_rnn_kernel(num_layers, T, B, H):
    """Builds the fused kernel.

    Kernel ref layout (in order):
      x_ref               [T*B, E]      time-major, batch-padded, flattened
      per layer l:
        w_ih_t            [in_l, 4H]    transposed PyTorch weight_ih
        w_hh_t            [H, 4H]       transposed PyTorch weight_hh
        bias              [1, 4H]       b_ih + b_hh
      fc_w_t              [H, C_pad]
      fc_b                [1, C_pad]
      out_ref             [B, C_pad]    (output)
      seq_sc              [T*B, H]      (VMEM scratch: inter-layer sequence)
    """

    def kernel(*refs):
        x_ref = refs[0]
        w_refs = refs[1:1 + 3 * num_layers]
        fcw_ref = refs[1 + 3 * num_layers]
        fcb_ref = refs[2 + 3 * num_layers]
        out_ref = refs[3 + 3 * num_layers]
        seq_sc = refs[4 + 3 * num_layers]

        layer_in = x_ref[...]                              # [T*B, in_0]
        h_last = None
        for l in range(num_layers):
            w_ih = w_refs[3 * l][...]                      # [in_l, 4H]
            w_hh = w_refs[3 * l + 1][...]                  # [H, 4H]
            bias = w_refs[3 * l + 2][...]                  # [1, 4H]

            # Hoisted input projection for the whole sequence, bias folded in.
            gx = jnp.dot(layer_in, w_ih,
                         preferred_element_type=jnp.float32) + bias  # [T*B,4H]

            h = jnp.zeros((B, H), jnp.float32)
            c = jnp.zeros((B, H), jnp.float32)
            last = (l == num_layers - 1)

            # Fully unrolled recurrence (T static & small): only h @ W_hh on
            # the serial critical path.
            for t in range(T):
                g = gx[t * B:(t + 1) * B, :] + jnp.dot(
                    h, w_hh, preferred_element_type=jnp.float32)  # [B, 4H]
                # One full-lane-width sigmoid covers i, f, o; tanh only on g.
                sig = jax.nn.sigmoid(g)
                i_g = sig[:, 0 * H:1 * H]
                f_g = sig[:, 1 * H:2 * H]
                o_g = sig[:, 3 * H:4 * H]
                g_g = jnp.tanh(g[:, 2 * H:3 * H])
                c = f_g * c + i_g * g_g
                h = o_g * jnp.tanh(c)
                if not last:
                    seq_sc[t * B:(t + 1) * B, :] = h       # stays in VMEM

            if not last:
                layer_in = seq_sc[...]                     # next layer's input
            h_last = h

        # Fused FC on hidden[-1]; lane-dense (padded) output store.
        out_ref[...] = (jnp.dot(h_last, fcw_ref[...],
                                preferred_element_type=jnp.float32)
                        + fcb_ref[...]).astype(out_ref.dtype)

    return kernel


_VMEM = pl.BlockSpec(memory_space=pltpu.MemorySpace.VMEM)


def rnnnet_forward_pallas(params, text):
    """text: int32 [L, Btxt]  ->  logits [L, num_class] (matches PyTorch)."""
    num_layers = len(params["lstm"])
    H = params["lstm"][0]["w_hh"].shape[1]
    C = params["fc_w"].shape[0]

    # Embedding gather + time-major transpose done once, wrapper side.
    emb = params["embedding"][text]                 # [L, Btxt, E]
    x = jnp.transpose(emb, (1, 0, 2))               # [T=Btxt, B=L, E]
    T, B, E = x.shape

    # Pad effective batch to a multiple of 8 sublanes.
    B_pad = max(8, ((B + 7) // 8) * 8)
    if B_pad != B:
        x = jnp.pad(x, ((0, 0), (0, B_pad - B), (0, 0)))
    x2d = x.reshape(T * B_pad, E)                   # [T*B_pad, E]

    # Prepack per-layer weights (transposed) and combined biases.
    flat_w = []
    for layer in params["lstm"]:
        flat_w.append(layer["w_ih"].T)                            # [in, 4H]
        flat_w.append(layer["w_hh"].T)                            # [H, 4H]
        flat_w.append((layer["b_ih"] + layer["b_hh"])[None, :])   # [1, 4H]

    # Lane-dense FC output: pad num_class up to a multiple of 128.
    C_pad = ((C + 127) // 128) * 128
    fc_w_t = jnp.pad(params["fc_w"].T, ((0, 0), (0, C_pad - C)))  # [H, C_pad]
    fc_b = jnp.pad(params["fc_b"], (0, C_pad - C))[None, :]       # [1, C_pad]

    kernel = _make_fused_rnn_kernel(num_layers, T, B_pad, H)
    out = pl.pallas_call(
        kernel,
        out_shape=jax.ShapeDtypeStruct((B_pad, C_pad), jnp.float32),
        in_specs=[_VMEM] * (3 + 3 * num_layers),
        out_specs=_VMEM,
        scratch_shapes=[pltpu.VMEM((T * B_pad, H), jnp.float32)],
    )(x2d, *flat_w, fc_w_t, fc_b)

    return out[:B, :C]                              # [L, num_class]


rnnnet_forward = jax.jit(rnnnet_forward_pallas)


# ----------------------------------------------------------------------------
# Parameter init (mirrors the PyTorch module)
# ----------------------------------------------------------------------------
def init_params(key, len_vocab, embedding_size, hidden_size, num_class,
                num_layers):
    keys = jax.random.split(key, 2 + 4 * num_layers + 2)
    k_idx = 0

    def nxt():
        nonlocal k_idx
        k = keys[k_idx]
        k_idx += 1
        return k

    params = {}
    params["embedding"] = jax.random.normal(
        nxt(), (len_vocab, embedding_size), jnp.float32)

    lstm_scale = 1.0 / jnp.sqrt(hidden_size)
    layers = []
    for layer in range(num_layers):
        in_size = embedding_size if layer == 0 else hidden_size
        w_ih = jax.random.uniform(nxt(), (4 * hidden_size, in_size),
                                  jnp.float32, -lstm_scale, lstm_scale)
        w_hh = jax.random.uniform(nxt(), (4 * hidden_size, hidden_size),
                                  jnp.float32, -lstm_scale, lstm_scale)
        b_ih = jax.random.uniform(nxt(), (4 * hidden_size,),
                                  jnp.float32, -lstm_scale, lstm_scale)
        b_hh = jax.random.uniform(nxt(), (4 * hidden_size,),
                                  jnp.float32, -lstm_scale, lstm_scale)
        layers.append({"w_ih": w_ih, "w_hh": w_hh, "b_ih": b_ih, "b_hh": b_hh})
    params["lstm"] = layers

    fc_scale = 1.0 / jnp.sqrt(hidden_size)
    params["fc_w"] = jax.random.uniform(nxt(), (num_class, hidden_size),
                                        jnp.float32, -fc_scale, fc_scale)
    params["fc_b"] = jax.random.uniform(nxt(), (num_class,),
                                        jnp.float32, -fc_scale, fc_scale)
    return params


# ----------------------------------------------------------------------------
# Pure-JAX reference (correctness check)
# ----------------------------------------------------------------------------
def rnnnet_reference(params, text):
    emb = params["embedding"][text]                 # [L, Btxt, E]
    x = jnp.transpose(emb, (1, 0, 2))               # [T, B, E]
    H = params["lstm"][0]["w_hh"].shape[1]

    for layer in params["lstm"]:
        w_ih_t = layer["w_ih"].T
        w_hh_t = layer["w_hh"].T
        b = layer["b_ih"] + layer["b_hh"]

        def step(carry, x_t):
            h, c = carry
            gates = x_t @ w_ih_t + h @ w_hh_t + b
            i = jax.nn.sigmoid(gates[:, 0 * H:1 * H])
            f = jax.nn.sigmoid(gates[:, 1 * H:2 * H])
            g = jnp.tanh(gates[:, 2 * H:3 * H])
            o = jax.nn.sigmoid(gates[:, 3 * H:4 * H])
            c_new = f * c + i * g
            h_new = o * jnp.tanh(c_new)
            return (h_new, c_new), h_new

        B = x.shape[1]
        init = (jnp.zeros((B, H), jnp.float32), jnp.zeros((B, H), jnp.float32))
        (h_fin, _), seq = jax.lax.scan(step, init, x)
        x = seq
    return h_fin @ params["fc_w"].T + params["fc_b"]


# ----------------------------------------------------------------------------
if __name__ == "__main__":
    len_vocab = 50
    embedding_size = 16
    hidden_size = 32          # 4H = 128 -> lane-aligned gate matmuls
    num_class = 4
    num_layers = 2
    L, Btxt = 6, 8            # text: [sentence_len, batch_size]

    key = jax.random.PRNGKey(0)
    k_param, k_text = jax.random.split(key)
    params = init_params(k_param, len_vocab, embedding_size, hidden_size,
                         num_class, num_layers)
    text = jax.random.randint(k_text, (L, Btxt), 0, len_vocab, jnp.int32)

    logits = rnnnet_forward(params, text)
    jax.block_until_ready(logits)

    ref = rnnnet_reference(params, text)
    assert logits.shape == (L, num_class), logits.shape
    assert jnp.allclose(logits, ref, atol=1e-5, rtol=1e-5), \
        f"max err {jnp.max(jnp.abs(logits - ref))}"

    print("KERNEL_OK")
</pallas_src>

<mosaic_0001>
module attributes {stable_mosaic.version = 11 : i64} {
  func.func @kernel(%arg0: memref<64x16xf32, #tpu.memory_space<vmem>>, %arg1: memref<16x128xf32, #tpu.memory_space<vmem>>, %arg2: memref<32x128xf32, #tpu.memory_space<vmem>>, %arg3: memref<1x128xf32, #tpu.memory_space<vmem>>, %arg4: memref<32x128xf32, #tpu.memory_space<vmem>>, %arg5: memref<32x128xf32, #tpu.memory_space<vmem>>, %arg6: memref<1x128xf32, #tpu.memory_space<vmem>>, %arg7: memref<32x128xf32, #tpu.memory_space<vmem>>, %arg8: memref<1x128xf32, #tpu.memory_space<vmem>>, %arg9: memref<8x128xf32, #tpu.memory_space<vmem>>, %arg10: memref<64x32xf32, #tpu.memory_space<vmem>>) attributes {dimension_semantics = [], scalar_prefetch = 0 : i64, scratch_operands = 1 : i64, tpu.core_type = #tpu.core_type<tc>} {
    %c0 = arith.constant 0 : index
    %c0_0 = arith.constant 0 : index
    %0 = vector.load %arg0[%c0, %c0_0] : memref<64x16xf32, #tpu.memory_space<vmem>>, vector<64x16xf32>
    %c0_1 = arith.constant 0 : index
    %c0_2 = arith.constant 0 : index
    %1 = vector.load %arg1[%c0_1, %c0_2] : memref<16x128xf32, #tpu.memory_space<vmem>>, vector<16x128xf32>
    %c0_3 = arith.constant 0 : index
    %c0_4 = arith.constant 0 : index
    %2 = vector.load %arg2[%c0_3, %c0_4] : memref<32x128xf32, #tpu.memory_space<vmem>>, vector<32x128xf32>
    %c0_5 = arith.constant 0 : index
    %c0_6 = arith.constant 0 : index
    %3 = vector.load %arg3[%c0_5, %c0_6] : memref<1x128xf32, #tpu.memory_space<vmem>>, vector<1x128xf32>
    %cst = arith.constant dense<0.000000e+00> : vector<64x128xf32>
    %4 = tpu.matmul %0, %1, %cst {dimension_numbers = #tpu.dot_dimension_numbers<[1], [0], [0], [1], [0, 0, 1, 1], [], []>} : vector<64x16xf32>, vector<16x128xf32>, vector<64x128xf32> -> vector<64x128xf32>
    %5 = vector.broadcast %3 : vector<1x128xf32> to vector<64x128xf32>
    %6 = arith.addf %4, %5 : vector<64x128xf32>
    %cst_7 = arith.constant 0.000000e+00 : f32
    %7 = vector.broadcast %cst_7 : f32 to vector<8x32xf32>
    %cst_8 = arith.constant 0.000000e+00 : f32
    %8 = vector.broadcast %cst_8 : f32 to vector<8x32xf32>
    %9 = vector.extract_strided_slice %6 {offsets = [0, 0], sizes = [8, 128], strides = [1, 1]} : vector<64x128xf32> to vector<8x128xf32>
    %cst_9 = arith.constant dense<0.000000e+00> : vector<8x128xf32>
    %10 = tpu.matmul %7, %2, %cst_9 {dimension_numbers = #tpu.dot_dimension_numbers<[1], [0], [0], [1], [0, 0, 1, 1], [], []>} : vector<8x32xf32>, vector<32x128xf32>, vector<8x128xf32> -> vector<8x128xf32>
    %11 = arith.addf %9, %10 : vector<8x128xf32>
    %12 = arith.negf %11 : vector<8x128xf32>
    %13 = math.exp %12 : vector<8x128xf32>
    %cst_10 = arith.constant 1.000000e+00 : f32
    %14 = vector.broadcast %cst_10 : f32 to vector<8x128xf32>
    %15 = arith.addf %14, %13 : vector<8x128xf32>
    %16 = arith.divf %14, %15 : vector<8x128xf32>
    %17 = vector.extract_strided_slice %16 {offsets = [0, 0], sizes = [8, 32], strides = [1, 1]} : vector<8x128xf32> to vector<8x32xf32>
    %18 = vector.extract_strided_slice %16 {offsets = [0, 32], sizes = [8, 32], strides = [1, 1]} : vector<8x128xf32> to vector<8x32xf32>
    %19 = vector.extract_strided_slice %16 {offsets = [0, 96], sizes = [8, 32], strides = [1, 1]} : vector<8x128xf32> to vector<8x32xf32>
    %20 = vector.extract_strided_slice %11 {offsets = [0, 64], sizes = [8, 32], strides = [1, 1]} : vector<8x128xf32> to vector<8x32xf32>
    %21 = math.tanh %20 : vector<8x32xf32>
    %22 = arith.mulf %18, %8 : vector<8x32xf32>
    %23 = arith.mulf %17, %21 : vector<8x32xf32>
    %24 = arith.addf %22, %23 : vector<8x32xf32>
    %25 = math.tanh %24 : vector<8x32xf32>
    %26 = arith.mulf %19, %25 : vector<8x32xf32>
    %c0_11 = arith.constant 0 : index
    %c0_12 = arith.constant 0 : index
    %27 = vector.load %arg10[%c0_11, %c0_12] : memref<64x32xf32, #tpu.memory_space<vmem>>, vector<8x32xf32>
    tpu.vector_store %arg10[%c0_11, %c0_12], %26 {strides = array<i32>} : memref<64x32xf32, #tpu.memory_space<vmem>>, vector<8x32xf32>,
    %28 = vector.extract_strided_slice %6 {offsets = [8, 0], sizes = [8, 128], strides = [1, 1]} : vector<64x128xf32> to vector<8x128xf32>
    %cst_13 = arith.constant dense<0.000000e+00> : vector<8x128xf32>
    %29 = tpu.matmul %26, %2, %cst_13 {dimension_numbers = #tpu.dot_dimension_numbers<[1], [0], [0], [1], [0, 0, 1, 1], [], []>} : vector<8x32xf32>, vector<32x128xf32>, vector<8x128xf32> -> vector<8x128xf32>
    %30 = arith.addf %28, %29 : vector<8x128xf32>
    %31 = arith.negf %30 : vector<8x128xf32>
    %32 = math.exp %31 : vector<8x128xf32>
    %cst_14 = arith.constant 1.000000e+00 : f32
    %33 = vector.broadcast %cst_14 : f32 to vector<8x128xf32>
    %34 = arith.addf %33, %32 : vector<8x128xf32>
    %35 = arith.divf %33, %34 : vector<8x128xf32>
    %36 = vector.extract_strided_slice %35 {offsets = [0, 0], sizes = [8, 32], strides = [1, 1]} : vector<8x128xf32> to vector<8x32xf32>
    %37 = vector.extract_strided_slice %35 {offsets = [0, 32], sizes = [8, 32], strides = [1, 1]} : vector<8x128xf32> to vector<8x32xf32>
    %38 = vector.extract_strided_slice %35 {offsets = [0, 96], sizes = [8, 32], strides = [1, 1]} : vector<8x128xf32> to vector<8x32xf32>
    %39 = vector.extract_strided_slice %30 {offsets = [0, 64], sizes = [8, 32], strides = [1, 1]} : vector<8x128xf32> to vector<8x32xf32>
    %40 = math.tanh %39 : vector<8x32xf32>
    %41 = arith.mulf %37, %24 : vector<8x32xf32>
    %42 = arith.mulf %36, %40 : vector<8x32xf32>
    %43 = arith.addf %41, %42 : vector<8x32xf32>
    %44 = math.tanh %43 : vector<8x32xf32>
    %45 = arith.mulf %38, %44 : vector<8x32xf32>
    %c8 = arith.constant 8 : index
    %c0_15 = arith.constant 0 : index
    %46 = vector.load %arg10[%c8, %c0_15] : memref<64x32xf32, #tpu.memory_space<vmem>>, vector<8x32xf32>
    tpu.vector_store %arg10[%c8, %c0_15], %45 {strides = array<i32>} : memref<64x32xf32, #tpu.memory_space<vmem>>, vector<8x32xf32>,
    %47 = vector.extract_strided_slice %6 {offsets = [16, 0], sizes = [8, 128], strides = [1, 1]} : vector<64x128xf32> to vector<8x128xf32>
    %cst_16 = arith.constant dense<0.000000e+00> : vector<8x128xf32>
    %48 = tpu.matmul %45, %2, %cst_16 {dimension_numbers = #tpu.dot_dimension_numbers<[1], [0], [0], [1], [0, 0, 1, 1], [], []>} : vector<8x32xf32>, vector<32x128xf32>, vector<8x128xf32> -> vector<8x128xf32>
    %49 = arith.addf %47, %48 : vector<8x128xf32>
    %50 = arith.negf %49 : vector<8x128xf32>
    %51 = math.exp %50 : vector<8x128xf32>
    %cst_17 = arith.constant 1.000000e+00 : f32
    %52 = vector.broadcast %cst_17 : f32 to vector<8x128xf32>
    %53 = arith.addf %52, %51 : vector<8x128xf32>
    %54 = arith.divf %52, %53 : vector<8x128xf32>
    %55 = vector.extract_strided_slice %54 {offsets = [0, 0], sizes = [8, 32], strides = [1, 1]} : vector<8x128xf32> to vector<8x32xf32>
    %56 = vector.extract_strided_slice %54 {offsets = [0, 32], sizes = [8, 32], strides = [1, 1]} : vector<8x128xf32> to vector<8x32xf32>
    %57 = vector.extract_strided_slice %54 {offsets = [0, 96], sizes = [8, 32], strides = [1, 1]} : vector<8x128xf32> to vector<8x32xf32>
    %58 = vector.extract_strided_slice %49 {offsets = [0, 64], sizes = [8, 32], strides = [1, 1]} : vector<8x128xf32> to vector<8x32xf32>
    %59 = math.tanh %58 : vector<8x32xf32>
    %60 = arith.mulf %56, %43 : vector<8x32xf32>
    %61 = arith.mulf %55, %59 : vector<8x32xf32>
    %62 = arith.addf %60, %61 : vector<8x32xf32>
    %63 = math.tanh %62 : vector<8x32xf32>
    %64 = arith.mulf %57, %63 : vector<8x32xf32>
    %c16 = arith.constant 16 : index
    %c0_18 = arith.constant 0 : index
    %65 = vector.load %arg10[%c16, %c0_18] : memref<64x32xf32, #tpu.memory_space<vmem>>, vector<8x32xf32>
    tpu.vector_store %arg10[%c16, %c0_18], %64 {strides = array<i32>} : memref<64x32xf32, #tpu.memory_space<vmem>>, vector<8x32xf32>,
    %66 = vector.extract_strided_slice %6 {offsets = [24, 0], sizes = [8, 128], strides = [1, 1]} : vector<64x128xf32> to vector<8x128xf32>
    %cst_19 = arith.constant dense<0.000000e+00> : vector<8x128xf32>
    %67 = tpu.matmul %64, %2, %cst_19 {dimension_numbers = #tpu.dot_dimension_numbers<[1], [0], [0], [1], [0, 0, 1, 1], [], []>} : vector<8x32xf32>, vector<32x128xf32>, vector<8x128xf32> -> vector<8x128xf32>
    %68 = arith.addf %66, %67 : vector<8x128xf32>
    %69 = arith.negf %68 : vector<8x128xf32>
    %70 = math.exp %69 : vector<8x128xf32>
    %cst_20 = arith.constant 1.000000e+00 : f32
    %71 = vector.broadcast %cst_20 : f32 to vector<8x128xf32>
    %72 = arith.addf %71, %70 : vector<8x128xf32>
    %73 = arith.divf %71, %72 : vector<8x128xf32>
    %74 = vector.extract_strided_slice %73 {offsets = [0, 0], sizes = [8, 32], strides = [1, 1]} : vector<8x128xf32> to vector<8x32xf32>
    %75 = vector.extract_strided_slice %73 {offsets = [0, 32], sizes = [8, 32], strides = [1, 1]} : vector<8x128xf32> to vector<8x32xf32>
    %76 = vector.extract_strided_slice %73 {offsets = [0, 96], sizes = [8, 32], strides = [1, 1]} : vector<8x128xf32> to vector<8x32xf32>
    %77 = vector.extract_strided_slice %68 {offsets = [0, 64], sizes = [8, 32], strides = [1, 1]} : vector<8x128xf32> to vector<8x32xf32>
    %78 = math.tanh %77 : vector<8x32xf32>
    %79 = arith.mulf %75, %62 : vector<8x32xf32>
    %80 = arith.mulf %74, %78 : vector<8x32xf32>
    %81 = arith.addf %79, %80 : vector<8x32xf32>
    %82 = math.tanh %81 : vector<8x32xf32>
    %83 = arith.mulf %76, %82 : vector<8x32xf32>
    %c24 = arith.constant 24 : index
    %c0_21 = arith.constant 0 : index
    %84 = vector.load %arg10[%c24, %c0_21] : memref<64x32xf32, #tpu.memory_space<vmem>>, vector<8x32xf32>
    tpu.vector_store %arg10[%c24, %c0_21], %83 {strides = array<i32>} : memref<64x32xf32, #tpu.memory_space<vmem>>, vector<8x32xf32>,
    %85 = vector.extract_strided_slice %6 {offsets = [32, 0], sizes = [8, 128], strides = [1, 1]} : vector<64x128xf32> to vector<8x128xf32>
    %cst_22 = arith.constant dense<0.000000e+00> : vector<8x128xf32>
    %86 = tpu.matmul %83, %2, %cst_22 {dimension_numbers = #tpu.dot_dimension_numbers<[1], [0], [0], [1], [0, 0, 1, 1], [], []>} : vector<8x32xf32>, vector<32x128xf32>, vector<8x128xf32> -> vector<8x128xf32>
    %87 = arith.addf %85, %86 : vector<8x128xf32>
    %88 = arith.negf %87 : vector<8x128xf32>
    %89 = math.exp %88 : vector<8x128xf32>
    %cst_23 = arith.constant 1.000000e+00 : f32
    %90 = vector.broadcast %cst_23 : f32 to vector<8x128xf32>
    %91 = arith.addf %90, %89 : vector<8x128xf32>
    %92 = arith.divf %90, %91 : vector<8x128xf32>
    %93 = vector.extract_strided_slice %92 {offsets = [0, 0], sizes = [8, 32], strides = [1, 1]} : vector<8x128xf32> to vector<8x32xf32>
    %94 = vector.extract_strided_slice %92 {offsets = [0, 32], sizes = [8, 32], strides = [1, 1]} : vector<8x128xf32> to vector<8x32xf32>
    %95 = vector.extract_strided_slice %92 {offsets = [0, 96], sizes = [8, 32], strides = [1, 1]} : vector<8x128xf32> to vector<8x32xf32>
    %96 = vector.extract_strided_slice %87 {offsets = [0, 64], sizes = [8, 32], strides = [1, 1]} : vector<8x128xf32> to vector<8x32xf32>
    %97 = math.tanh %96 : vector<8x32xf32>
    %98 = arith.mulf %94, %81 : vector<8x32xf32>
    %99 = arith.mulf %93, %97 : vector<8x32xf32>
    %100 = arith.addf %98, %99 : vector<8x32xf32>
    %101 = math.tanh %100 : vector<8x32xf32>
    %102 = arith.mulf %95, %101 : vector<8x32xf32>
    %c32 = arith.constant 32 : index
    %c0_24 = arith.constant 0 : index
    %103 = vector.load %arg10[%c32, %c0_24] : memref<64x32xf32, #tpu.memory_space<vmem>>, vector<8x32xf32>
    tpu.vector_store %arg10[%c32, %c0_24], %102 {strides = array<i32>} : memref<64x32xf32, #tpu.memory_space<vmem>>, vector<8x32xf32>,
    %104 = vector.extract_strided_slice %6 {offsets = [40, 0], sizes = [8, 128], strides = [1, 1]} : vector<64x128xf32> to vector<8x128xf32>
    %cst_25 = arith.constant dense<0.000000e+00> : vector<8x128xf32>
    %105 = tpu.matmul %102, %2, %cst_25 {dimension_numbers = #tpu.dot_dimension_numbers<[1], [0], [0], [1], [0, 0, 1, 1], [], []>} : vector<8x32xf32>, vector<32x128xf32>, vector<8x128xf32> -> vector<8x128xf32>
    %106 = arith.addf %104, %105 : vector<8x128xf32>
    %107 = arith.negf %106 : vector<8x128xf32>
    %108 = math.exp %107 : vector<8x128xf32>
    %cst_26 = arith.constant 1.000000e+00 : f32
    %109 = vector.broadcast %cst_26 : f32 to vector<8x128xf32>
    %110 = arith.addf %109, %108 : vector<8x128xf32>
    %111 = arith.divf %109, %110 : vector<8x128xf32>
    %112 = vector.extract_strided_slice %111 {offsets = [0, 0], sizes = [8, 32], strides = [1, 1]} : vector<8x128xf32> to vector<8x32xf32>
    %113 = vector.extract_strided_slice %111 {offsets = [0, 32], sizes = [8, 32], strides = [1, 1]} : vector<8x128xf32> to vector<8x32xf32>
    %114 = vector.extract_strided_slice %111 {offsets = [0, 96], sizes = [8, 32], strides = [1, 1]} : vector<8x128xf32> to vector<8x32xf32>
    %115 = vector.extract_strided_slice %106 {offsets = [0, 64], sizes = [8, 32], strides = [1, 1]} : vector<8x128xf32> to vector<8x32xf32>
    %116 = math.tanh %115 : vector<8x32xf32>
    %117 = arith.mulf %113, %100 : vector<8x32xf32>
    %118 = arith.mulf %112, %116 : vector<8x32xf32>
    %119 = arith.addf %117, %118 : vector<8x32xf32>
    %120 = math.tanh %119 : vector<8x32xf32>
    %121 = arith.mulf %114, %120 : vector<8x32xf32>
    %c40 = arith.constant 40 : index
    %c0_27 = arith.constant 0 : index
    %122 = vector.load %arg10[%c40, %c0_27] : memref<64x32xf32, #tpu.memory_space<vmem>>, vector<8x32xf32>
    tpu.vector_store %arg10[%c40, %c0_27], %121 {strides = array<i32>} : memref<64x32xf32, #tpu.memory_space<vmem>>, vector<8x32xf32>,
    %123 = vector.extract_strided_slice %6 {offsets = [48, 0], sizes = [8, 128], strides = [1, 1]} : vector<64x128xf32> to vector<8x128xf32>
    %cst_28 = arith.constant dense<0.000000e+00> : vector<8x128xf32>
    %124 = tpu.matmul %121, %2, %cst_28 {dimension_numbers = #tpu.dot_dimension_numbers<[1], [0], [0], [1], [0, 0, 1, 1], [], []>} : vector<8x32xf32>, vector<32x128xf32>, vector<8x128xf32> -> vector<8x128xf32>
    %125 = arith.addf %123, %124 : vector<8x128xf32>
    %126 = arith.negf %125 : vector<8x128xf32>
    %127 = math.exp %126 : vector<8x128xf32>
    %cst_29 = arith.constant 1.000000e+00 : f32
    %128 = vector.broadcast %cst_29 : f32 to vector<8x128xf32>
    %129 = arith.addf %128, %127 : vector<8x128xf32>
    %130 = arith.divf %128, %129 : vector<8x128xf32>
    %131 = vector.extract_strided_slice %130 {offsets = [0, 0], sizes = [8, 32], strides = [1, 1]} : vector<8x128xf32> to vector<8x32xf32>
    %132 = vector.extract_strided_slice %130 {offsets = [0, 32], sizes = [8, 32], strides = [1, 1]} : vector<8x128xf32> to vector<8x32xf32>
    %133 = vector.extract_strided_slice %130 {offsets = [0, 96], sizes = [8, 32], strides = [1, 1]} : vector<8x128xf32> to vector<8x32xf32>
    %134 = vector.extract_strided_slice %125 {offsets = [0, 64], sizes = [8, 32], strides = [1, 1]} : vector<8x128xf32> to vector<8x32xf32>
    %135 = math.tanh %134 : vector<8x32xf32>
    %136 = arith.mulf %132, %119 : vector<8x32xf32>
    %137 = arith.mulf %131, %135 : vector<8x32xf32>
    %138 = arith.addf %136, %137 : vector<8x32xf32>
    %139 = math.tanh %138 : vector<8x32xf32>
    %140 = arith.mulf %133, %139 : vector<8x32xf32>
    %c48 = arith.constant 48 : index
    %c0_30 = arith.constant 0 : index
    %141 = vector.load %arg10[%c48, %c0_30] : memref<64x32xf32, #tpu.memory_space<vmem>>, vector<8x32xf32>
    tpu.vector_store %arg10[%c48, %c0_30], %140 {strides = array<i32>} : memref<64x32xf32, #tpu.memory_space<vmem>>, vector<8x32xf32>,
    %142 = vector.extract_strided_slice %6 {offsets = [56, 0], sizes = [8, 128], strides = [1, 1]} : vector<64x128xf32> to vector<8x128xf32>
    %cst_31 = arith.constant dense<0.000000e+00> : vector<8x128xf32>
    %143 = tpu.matmul %140, %2, %cst_31 {dimension_numbers = #tpu.dot_dimension_numbers<[1], [0], [0], [1], [0, 0, 1, 1], [], []>} : vector<8x32xf32>, vector<32x128xf32>, vector<8x128xf32> -> vector<8x128xf32>
    %144 = arith.addf %142, %143 : vector<8x128xf32>
    %145 = arith.negf %144 : vector<8x128xf32>
    %146 = math.exp %145 : vector<8x128xf32>
    %cst_32 = arith.constant 1.000000e+00 : f32
    %147 = vector.broadcast %cst_32 : f32 to vector<8x128xf32>
    %148 = arith.addf %147, %146 : vector<8x128xf32>
    %149 = arith.divf %147, %148 : vector<8x128xf32>
    %150 = vector.extract_strided_slice %149 {offsets = [0, 0], sizes = [8, 32], strides = [1, 1]} : vector<8x128xf32> to vector<8x32xf32>
    %151 = vector.extract_strided_slice %149 {offsets = [0, 32], sizes = [8, 32], strides = [1, 1]} : vector<8x128xf32> to vector<8x32xf32>
    %152 = vector.extract_strided_slice %149 {offsets = [0, 96], sizes = [8, 32], strides = [1, 1]} : vector<8x128xf32> to vector<8x32xf32>
    %153 = vector.extract_strided_slice %144 {offsets = [0, 64], sizes = [8, 32], strides = [1, 1]} : vector<8x128xf32> to vector<8x32xf32>
    %154 = math.tanh %153 : vector<8x32xf32>
    %155 = arith.mulf %151, %138 : vector<8x32xf32>
    %156 = arith.mulf %150, %154 : vector<8x32xf32>
    %157 = arith.addf %155, %156 : vector<8x32xf32>
    %158 = math.tanh %157 : vector<8x32xf32>
    %159 = arith.mulf %152, %158 : vector<8x32xf32>
    %c56 = arith.constant 56 : index
    %c0_33 = arith.constant 0 : index
    %160 = vector.load %arg10[%c56, %c0_33] : memref<64x32xf32, #tpu.memory_space<vmem>>, vector<8x32xf32>
    tpu.vector_store %arg10[%c56, %c0_33], %159 {strides = array<i32>} : memref<64x32xf32, #tpu.memory_space<vmem>>, vector<8x32xf32>,
    %c0_34 = arith.constant 0 : index
    %c0_35 = arith.constant 0 : index
    %161 = vector.load %arg10[%c0_34, %c0_35] : memref<64x32xf32, #tpu.memory_space<vmem>>, vector<64x32xf32>
    %c0_36 = arith.constant 0 : index
    %c0_37 = arith.constant 0 : index
    %162 = vector.load %arg4[%c0_36, %c0_37] : memref<32x128xf32, #tpu.memory_space<vmem>>, vector<32x128xf32>
    %c0_38 = arith.constant 0 : index
    %c0_39 = arith.constant 0 : index
    %163 = vector.load %arg5[%c0_38, %c0_39] : memref<32x128xf32, #tpu.memory_space<vmem>>, vector<32x128xf32>
    %c0_40 = arith.constant 0 : index
    %c0_41 = arith.constant 0 : index
    %164 = vector.load %arg6[%c0_40, %c0_41] : memref<1x128xf32, #tpu.memory_space<vmem>>, vector<1x128xf32>
    %cst_42 = arith.constant dense<0.000000e+00> : vector<64x128xf32>
    %165 = tpu.matmul %161, %162, %cst_42 {dimension_numbers = #tpu.dot_dimension_numbers<[1], [0], [0], [1], [0, 0, 1, 1], [], []>} : vector<64x32xf32>, vector<32x128xf32>, vector<64x128xf32> -> vector<64x128xf32>
    %166 = vector.broadcast %164 : vector<1x128xf32> to vector<64x128xf32>
    %167 = arith.addf %165, %166 : vector<64x128xf32>
    %cst_43 = arith.constant 0.000000e+00 : f32
    %168 = vector.broadcast %cst_43 : f32 to vector<8x32xf32>
    %cst_44 = arith.constant 0.000000e+00 : f32
    %169 = vector.broadcast %cst_44 : f32 to vector<8x32xf32>
    %170 = vector.extract_strided_slice %167 {offsets = [0, 0], sizes = [8, 128], strides = [1, 1]} : vector<64x128xf32> to vector<8x128xf32>
    %cst_45 = arith.constant dense<0.000000e+00> : vector<8x128xf32>
    %171 = tpu.matmul %168, %163, %cst_45 {dimension_numbers = #tpu.dot_dimension_numbers<[1], [0], [0], [1], [0, 0, 1, 1], [], []>} : vector<8x32xf32>, vector<32x128xf32>, vector<8x128xf32> -> vector<8x128xf32>
    %172 = arith.addf %170, %171 : vector<8x128xf32>
    %173 = arith.negf %172 : vector<8x128xf32>
    %174 = math.exp %173 : vector<8x128xf32>
    %cst_46 = arith.constant 1.000000e+00 : f32
    %175 = vector.broadcast %cst_46 : f32 to vector<8x128xf32>
    %176 = arith.addf %175, %174 : vector<8x128xf32>
    %177 = arith.divf %175, %176 : vector<8x128xf32>
    %178 = vector.extract_strided_slice %177 {offsets = [0, 0], sizes = [8, 32], strides = [1, 1]} : vector<8x128xf32> to vector<8x32xf32>
    %179 = vector.extract_strided_slice %177 {offsets = [0, 32], sizes = [8, 32], strides = [1, 1]} : vector<8x128xf32> to vector<8x32xf32>
    %180 = vector.extract_strided_slice %177 {offsets = [0, 96], sizes = [8, 32], strides = [1, 1]} : vector<8x128xf32> to vector<8x32xf32>
    %181 = vector.extract_strided_slice %172 {offsets = [0, 64], sizes = [8, 32], strides = [1, 1]} : vector<8x128xf32> to vector<8x32xf32>
    %182 = math.tanh %181 : vector<8x32xf32>
    %183 = arith.mulf %179, %169 : vector<8x32xf32>
    %184 = arith.mulf %178, %182 : vector<8x32xf32>
    %185 = arith.addf %183, %184 : vector<8x32xf32>
    %186 = math.tanh %185 : vector<8x32xf32>
    %187 = arith.mulf %180, %186 : vector<8x32xf32>
    %188 = vector.extract_strided_slice %167 {offsets = [8, 0], sizes = [8, 128], strides = [1, 1]} : vector<64x128xf32> to vector<8x128xf32>
    %cst_47 = arith.constant dense<0.000000e+00> : vector<8x128xf32>
    %189 = tpu.matmul %187, %163, %cst_47 {dimension_numbers = #tpu.dot_dimension_numbers<[1], [0], [0], [1], [0, 0, 1, 1], [], []>} : vector<8x32xf32>, vector<32x128xf32>, vector<8x128xf32> -> vector<8x128xf32>
    %190 = arith.addf %188, %189 : vector<8x128xf32>
    %191 = arith.negf %190 : vector<8x128xf32>
    %192 = math.exp %191 : vector<8x128xf32>
    %cst_48 = arith.constant 1.000000e+00 : f32
    %193 = vector.broadcast %cst_48 : f32 to vector<8x128xf32>
    %194 = arith.addf %193, %192 : vector<8x128xf32>
    %195 = arith.divf %193, %194 : vector<8x128xf32>
    %196 = vector.extract_strided_slice %195 {offsets = [0, 0], sizes = [8, 32], strides = [1, 1]} : vector<8x128xf32> to vector<8x32xf32>
    %197 = vector.extract_strided_slice %195 {offsets = [0, 32], sizes = [8, 32], strides = [1, 1]} : vector<8x128xf32> to vector<8x32xf32>
    %198 = vector.extract_strided_slice %195 {offsets = [0, 96], sizes = [8, 32], strides = [1, 1]} : vector<8x128xf32> to vector<8x32xf32>
    %199 = vector.extract_strided_slice %190 {offsets = [0, 64], sizes = [8, 32], strides = [1, 1]} : vector<8x128xf32> to vector<8x32xf32>
    %200 = math.tanh %199 : vector<8x32xf32>
    %201 = arith.mulf %197, %185 : vector<8x32xf32>
    %202 = arith.mulf %196, %200 : vector<8x32xf32>
    %203 = arith.addf %201, %202 : vector<8x32xf32>
    %204 = math.tanh %203 : vector<8x32xf32>
    %205 = arith.mulf %198, %204 : vector<8x32xf32>
    %206 = vector.extract_strided_slice %167 {offsets = [16, 0], sizes = [8, 128], strides = [1, 1]} : vector<64x128xf32> to vector<8x128xf32>
    %cst_49 = arith.constant dense<0.000000e+00> : vector<8x128xf32>
    %207 = tpu.matmul %205, %163, %cst_49 {dimension_numbers = #tpu.dot_dimension_numbers<[1], [0], [0], [1], [0, 0, 1, 1], [], []>} : vector<8x32xf32>, vector<32x128xf32>, vector<8x128xf32> -> vector<8x128xf32>
    %208 = arith.addf %206, %207 : vector<8x128xf32>
    %209 = arith.negf %208 : vector<8x128xf32>
    %210 = math.exp %209 : vector<8x128xf32>
    %cst_50 = arith.constant 1.000000e+00 : f32
    %211 = vector.broadcast %cst_50 : f32 to vector<8x128xf32>
    %212 = arith.addf %211, %210 : vector<8x128xf32>
    %213 = arith.divf %211, %212 : vector<8x128xf32>
    %214 = vector.extract_strided_slice %213 {offsets = [0, 0], sizes = [8, 32], strides = [1, 1]} : vector<8x128xf32> to vector<8x32xf32>
    %215 = vector.extract_strided_slice %213 {offsets = [0, 32], sizes = [8, 32], strides = [1, 1]} : vector<8x128xf32> to vector<8x32xf32>
    %216 = vector.extract_strided_slice %213 {offsets = [0, 96], sizes = [8, 32], strides = [1, 1]} : vector<8x128xf32> to vector<8x32xf32>
    %217 = vector.extract_strided_slice %208 {offsets = [0, 64], sizes = [8, 32], strides = [1, 1]} : vector<8x128xf32> to vector<8x32xf32>
    %218 = math.tanh %217 : vector<8x32xf32>
    %219 = arith.mulf %215, %203 : vector<8x32xf32>
    %220 = arith.mulf %214, %218 : vector<8x32xf32>
    %221 = arith.addf %219, %220 : vector<8x32xf32>
    %222 = math.tanh %221 : vector<8x32xf32>
    %223 = arith.mulf %216, %222 : vector<8x32xf32>
    %224 = vector.extract_strided_slice %167 {offsets = [24, 0], sizes = [8, 128], strides = [1, 1]} : vector<64x128xf32> to vector<8x128xf32>
    %cst_51 = arith.constant dense<0.000000e+00> : vector<8x128xf32>
    %225 = tpu.matmul %223, %163, %cst_51 {dimension_numbers = #tpu.dot_dimension_numbers<[1], [0], [0], [1], [0, 0, 1, 1], [], []>} : vector<8x32xf32>, vector<32x128xf32>, vector<8x128xf32> -> vector<8x128xf32>
    %226 = arith.addf %224, %225 : vector<8x128xf32>
    %227 = arith.negf %226 : vector<8x128xf32>
    %228 = math.exp %227 : vector<8x128xf32>
    %cst_52 = arith.constant 1.000000e+00 : f32
    %229 = vector.broadcast %cst_52 : f32 to vector<8x128xf32>
    %230 = arith.addf %229, %228 : vector<8x128xf32>
    %231 = arith.divf %229, %230 : vector<8x128xf32>
    %232 = vector.extract_strided_slice %231 {offsets = [0, 0], sizes = [8, 32], strides = [1, 1]} : vector<8x128xf32> to vector<8x32xf32>
    %233 = vector.extract_strided_slice %231 {offsets = [0, 32], sizes = [8, 32], strides = [1, 1]} : vector<8x128xf32> to vector<8x32xf32>
    %234 = vector.extract_strided_slice %231 {offsets = [0, 96], sizes = [8, 32], strides = [1, 1]} : vector<8x128xf32> to vector<8x32xf32>
    %235 = vector.extract_strided_slice %226 {offsets = [0, 64], sizes = [8, 32], strides = [1, 1]} : vector<8x128xf32> to vector<8x32xf32>
    %236 = math.tanh %235 : vector<8x32xf32>
    %237 = arith.mulf %233, %221 : vector<8x32xf32>
    %238 = arith.mulf %232, %236 : vector<8x32xf32>
    %239 = arith.addf %237, %238 : vector<8x32xf32>
    %240 = math.tanh %239 : vector<8x32xf32>
    %241 = arith.mulf %234, %240 : vector<8x32xf32>
    %242 = vector.extract_strided_slice %167 {offsets = [32, 0], sizes = [8, 128], strides = [1, 1]} : vector<64x128xf32> to vector<8x128xf32>
    %cst_53 = arith.constant dense<0.000000e+00> : vector<8x128xf32>
    %243 = tpu.matmul %241, %163, %cst_53 {dimension_numbers = #tpu.dot_dimension_numbers<[1], [0], [0], [1], [0, 0, 1, 1], [], []>} : vector<8x32xf32>, vector<32x128xf32>, vector<8x128xf32> -> vector<8x128xf32>
    %244 = arith.addf %242, %243 : vector<8x128xf32>
    %245 = arith.negf %244 : vector<8x128xf32>
    %246 = math.exp %245 : vector<8x128xf32>
    %cst_54 = arith.constant 1.000000e+00 : f32
    %247 = vector.broadcast %cst_54 : f32 to vector<8x128xf32>
    %248 = arith.addf %247, %246 : vector<8x128xf32>
    %249 = arith.divf %247, %248 : vector<8x128xf32>
    %250 = vector.extract_strided_slice %249 {offsets = [0, 0], sizes = [8, 32], strides = [1, 1]} : vector<8x128xf32> to vector<8x32xf32>
    %251 = vector.extract_strided_slice %249 {offsets = [0, 32], sizes = [8, 32], strides = [1, 1]} : vector<8x128xf32> to vector<8x32xf32>
    %252 = vector.extract_strided_slice %249 {offsets = [0, 96], sizes = [8, 32], strides = [1, 1]} : vector<8x128xf32> to vector<8x32xf32>
    %253 = vector.extract_strided_slice %244 {offsets = [0, 64], sizes = [8, 32], strides = [1, 1]} : vector<8x128xf32> to vector<8x32xf32>
    %254 = math.tanh %253 : vector<8x32xf32>
    %255 = arith.mulf %251, %239 : vector<8x32xf32>
    %256 = arith.mulf %250, %254 : vector<8x32xf32>
    %257 = arith.addf %255, %256 : vector<8x32xf32>
    %258 = math.tanh %257 : vector<8x32xf32>
    %259 = arith.mulf %252, %258 : vector<8x32xf32>
    %260 = vector.extract_strided_slice %167 {offsets = [40, 0], sizes = [8, 128], strides = [1, 1]} : vector<64x128xf32> to vector<8x128xf32>
    %cst_55 = arith.constant dense<0.000000e+00> : vector<8x128xf32>
    %261 = tpu.matmul %259, %163, %cst_55 {dimension_numbers = #tpu.dot_dimension_numbers<[1], [0], [0], [1], [0, 0, 1, 1], [], []>} : vector<8x32xf32>, vector<32x128xf32>, vector<8x128xf32> -> vector<8x128xf32>
    %262 = arith.addf %260, %261 : vector<8x128xf32>
    %263 = arith.negf %262 : vector<8x128xf32>
    %264 = math.exp %263 : vector<8x128xf32>
    %cst_56 = arith.constant 1.000000e+00 : f32
    %265 = vector.broadcast %cst_56 : f32 to vector<8x128xf32>
    %266 = arith.addf %265, %264 : vector<8x128xf32>
    %267 = arith.divf %265, %266 : vector<8x128xf32>
    %268 = vector.extract_strided_slice %267 {offsets = [0, 0], sizes = [8, 32], strides = [1, 1]} : vector<8x128xf32> to vector<8x32xf32>
    %269 = vector.extract_strided_slice %267 {offsets = [0, 32], sizes = [8, 32], strides = [1, 1]} : vector<8x128xf32> to vector<8x32xf32>
    %270 = vector.extract_strided_slice %267 {offsets = [0, 96], sizes = [8, 32], strides = [1, 1]} : vector<8x128xf32> to vector<8x32xf32>
    %271 = vector.extract_strided_slice %262 {offsets = [0, 64], sizes = [8, 32], strides = [1, 1]} : vector<8x128xf32> to vector<8x32xf32>
    %272 = math.tanh %271 : vector<8x32xf32>
    %273 = arith.mulf %269, %257 : vector<8x32xf32>
    %274 = arith.mulf %268, %272 : vector<8x32xf32>
    %275 = arith.addf %273, %274 : vector<8x32xf32>
    %276 = math.tanh %275 : vector<8x32xf32>
    %277 = arith.mulf %270, %276 : vector<8x32xf32>
    %278 = vector.extract_strided_slice %167 {offsets = [48, 0], sizes = [8, 128], strides = [1, 1]} : vector<64x128xf32> to vector<8x128xf32>
    %cst_57 = arith.constant dense<0.000000e+00> : vector<8x128xf32>
    %279 = tpu.matmul %277, %163, %cst_57 {dimension_numbers = #tpu.dot_dimension_numbers<[1], [0], [0], [1], [0, 0, 1, 1], [], []>} : vector<8x32xf32>, vector<32x128xf32>, vector<8x128xf32> -> vector<8x128xf32>
    %280 = arith.addf %278, %279 : vector<8x128xf32>
    %281 = arith.negf %280 : vector<8x128xf32>
    %282 = math.exp %281 : vector<8x128xf32>
    %cst_58 = arith.constant 1.000000e+00 : f32
    %283 = vector.broadcast %cst_58 : f32 to vector<8x128xf32>
    %284 = arith.addf %283, %282 : vector<8x128xf32>
    %285 = arith.divf %283, %284 : vector<8x128xf32>
    %286 = vector.extract_strided_slice %285 {offsets = [0, 0], sizes = [8, 32], strides = [1, 1]} : vector<8x128xf32> to vector<8x32xf32>
    %287 = vector.extract_strided_slice %285 {offsets = [0, 32], sizes = [8, 32], strides = [1, 1]} : vector<8x128xf32> to vector<8x32xf32>
    %288 = vector.extract_strided_slice %285 {offsets = [0, 96], sizes = [8, 32], strides = [1, 1]} : vector<8x128xf32> to vector<8x32xf32>
    %289 = vector.extract_strided_slice %280 {offsets = [0, 64], sizes = [8, 32], strides = [1, 1]} : vector<8x128xf32> to vector<8x32xf32>
    %290 = math.tanh %289 : vector<8x32xf32>
    %291 = arith.mulf %287, %275 : vector<8x32xf32>
    %292 = arith.mulf %286, %290 : vector<8x32xf32>
    %293 = arith.addf %291, %292 : vector<8x32xf32>
    %294 = math.tanh %293 : vector<8x32xf32>
    %295 = arith.mulf %288, %294 : vector<8x32xf32>
    %296 = vector.extract_strided_slice %167 {offsets = [56, 0], sizes = [8, 128], strides = [1, 1]} : vector<64x128xf32> to vector<8x128xf32>
    %cst_59 = arith.constant dense<0.000000e+00> : vector<8x128xf32>
    %297 = tpu.matmul %295, %163, %cst_59 {dimension_numbers = #tpu.dot_dimension_numbers<[1], [0], [0], [1], [0, 0, 1, 1], [], []>} : vector<8x32xf32>, vector<32x128xf32>, vector<8x128xf32> -> vector<8x128xf32>
    %298 = arith.addf %296, %297 : vector<8x128xf32>
    %299 = arith.negf %298 : vector<8x128xf32>
    %300 = math.exp %299 : vector<8x128xf32>
    %cst_60 = arith.constant 1.000000e+00 : f32
    %301 = vector.broadcast %cst_60 : f32 to vector<8x128xf32>
    %302 = arith.addf %301, %300 : vector<8x128xf32>
    %303 = arith.divf %301, %302 : vector<8x128xf32>
    %304 = vector.extract_strided_slice %303 {offsets = [0, 0], sizes = [8, 32], strides = [1, 1]} : vector<8x128xf32> to vector<8x32xf32>
    %305 = vector.extract_strided_slice %303 {offsets = [0, 32], sizes = [8, 32], strides = [1, 1]} : vector<8x128xf32> to vector<8x32xf32>
    %306 = vector.extract_strided_slice %303 {offsets = [0, 96], sizes = [8, 32], strides = [1, 1]} : vector<8x128xf32> to vector<8x32xf32>
    %307 = vector.extract_strided_slice %298 {offsets = [0, 64], sizes = [8, 32], strides = [1, 1]} : vector<8x128xf32> to vector<8x32xf32>
    %308 = math.tanh %307 : vector<8x32xf32>
    %309 = arith.mulf %305, %293 : vector<8x32xf32>
    %310 = arith.mulf %304, %308 : vector<8x32xf32>
    %311 = arith.addf %309, %310 : vector<8x32xf32>
    %312 = math.tanh %311 : vector<8x32xf32>
    %313 = arith.mulf %306, %312 : vector<8x32xf32>
    %c0_61 = arith.constant 0 : index
    %c0_62 = arith.constant 0 : index
    %314 = vector.load %arg7[%c0_61, %c0_62] : memref<32x128xf32, #tpu.memory_space<vmem>>, vector<32x128xf32>
    %cst_63 = arith.constant dense<0.000000e+00> : vector<8x128xf32>
    %315 = tpu.matmul %313, %314, %cst_63 {dimension_numbers = #tpu.dot_dimension_numbers<[1], [0], [0], [1], [0, 0, 1, 1], [], []>} : vector<8x32xf32>, vector<32x128xf32>, vector<8x128xf32> -> vector<8x128xf32>
    %c0_64 = arith.constant 0 : index
    %c0_65 = arith.constant 0 : index
    %316 = vector.load %arg8[%c0_64, %c0_65] : memref<1x128xf32, #tpu.memory_space<vmem>>, vector<1x128xf32>
    %317 = vector.broadcast %316 : vector<1x128xf32> to vector<8x128xf32>
    %318 = arith.addf %315, %317 : vector<8x128xf32>
    %c0_66 = arith.constant 0 : index
    %c0_67 = arith.constant 0 : index
    %319 = vector.load %arg9[%c0_66, %c0_67] : memref<8x128xf32, #tpu.memory_space<vmem>>, vector<8x128xf32>
    tpu.vector_store %arg9[%c0_66, %c0_67], %318 {strides = array<i32>} : memref<8x128xf32, #tpu.memory_space<vmem>>, vector<8x128xf32>,
    return
  }
}

</mosaic_0001>

<bundles_post_ra>
// kernel: rnnnet_forward_pallas.1
= control target key start
LH: loop header
LB: loop body
LE: loop exit
PB: predicated region body
PF: predicated region fallthrough
CT: control target
= control target key end

     0   :  { %vm53_vm0 = vcmask 130048   ;;  %v2666_v0 = vmov 0.0|0.0   ;;  %vm2667_vm1 = vmmov 0   ;;  %v2668_v4 = vmov 0.0   ;;  %s2669_s25 = smov 64   ;;  %s3081_s1 = inlined_call_operand.vmem [shape: f32[16,128], index: 1, kind: input, shape index: {}]   ;;  %s3082_s2 = inlined_call_operand.vmem [shape: f32[32,128], index: 2, kind: input, shape index: {}]   ;;  %s3083_s0 = inlined_call_operand.vmem [shape: f32[64,16], index: 0, kind: input, shape index: {}]   ;;  %s3084_s3 = inlined_call_operand.vmem [shape: f32[1,128], index: 3, kind: input, shape index: {}]   ;;  %s3085_s4 = inlined_call_operand.vmem [shape: f32[32,128], index: 4, kind: input, shape index: {}]   ;;  %s3086_s5 = inlined_call_operand.vmem [shape: f32[32,128], index: 5, kind: input, shape index: {}]   ;;  %s3087_s6 = inlined_call_operand.vmem [shape: f32[1,128], index: 6, kind: input, shape index: {}]   ;;  %s3088_s7 = inlined_call_operand.vmem [shape: f32[32,128], index: 7, kind: input, shape index: {}]   ;;  %s3089_s8 = inlined_call_operand.vmem [shape: f32[1,128], index: 8, kind: input, shape index: {}]   ;;  %s3090_s9 = inlined_call_operand.vmem [shape: f32[8,128], index: 9, kind: output, shape index: {}]  }
   0x1   :  { %2423 = vmatprep.subr.bf16.mxu1 %v2666_v0  ;;  %v40_v1 = vld [vmem:[%s3081_s1] sm:$0xff]  ;;  %v41_v2 = vld [vmem:[%s3081_s1 + $0x8] sm:$0xff]  ;;  %2220 = vmatprep.mubr.msk.f32.mxu1 %vm2667_vm1, %v2668_v4  ;;  %v44_v9 = vld [vmem:[%s3082_s2 + $0x10] sm:$0xff]  ;;  %vm183_vm2 = vcmask 261120  }
   0x2   :  { %v42_v3 = vld [vmem:[%s3082_s2] sm:$0xff]  ;;  %v2419_v5 = vpack.c.bf16 %v41_v2, %v40_v1  ;;  %v43_v6 = vld [vmem:[%s3082_s2 + $0x8] sm:$0xff]  ;;  %v45_v10 = vld [vmem:[%s3082_s2 + $0x18] sm:$0xff] }
   0x3   :  { %v32_v7 = vld [vmem:[%s3083_s0] sm:$0xff]  ;;  %v2739_v8 = vpack.c.bf16 %v43_v6, %v42_v3  ;;  %v33_v11 = vld [vmem:[%s3083_s0 + $0x8] sm:$0xff]  ;;  %v2752_v12 = vpack.c.bf16 %v45_v10, %v44_v9  ;;  %v34_v48 = vld [vmem:[%s3083_s0 + $0x10] sm:$0xff] }
   0x4   :  { %2200 = vmatprep.mubr.msk.f32.mxu0 %vm53_vm0, %v32_v7  ;;  %2420 = vmatprep.subr.bf16.mxu0 %v2419_v5  ;;  %v2773_v13 = vld [vmem:[%s3084_s3] ss:$0 sm:$0xff]  ;;  %s2670_s3 = smov 32   ;;  %v35_v49 = vld [vmem:[%s3083_s0 + $0x18] sm:$0xff]  ;;  %v37_v51 = vld [vmem:[%s3083_s0 + $0x28] sm:$0xff] }
   0x5   :  { %2425 = vmatpush3.bf16.msra.mxu1 %v2739_v8  ;;  %2422 = vmatpush3.bf16.msra.mxu0 %v2419_v5  ;;  %v36_v50 = vld [vmem:[%s3083_s0 + $0x20] sm:$0xff]  ;;  %v38_v52 = vld [vmem:[%s3083_s0 + $0x30] sm:$0xff]  ;;  %v39_v53 = vld [vmem:[%s3083_s0 + $0x38] sm:$0xff] }
   0x6   :  { %2426 = vmatprep.subr.bf16.mxu1 %v2666_v0  ;;  %2435 = vmatprep.subr.bf16.mxu0 %v2666_v0 }
   0x8   :  { %2201 = vmatmul.mubr.msk.f32.vlgmr.msra.gmra.mrb[0].mxu0 %vm53_vm0, %v33_v11 }
   0x9   :  { %2428 = vmatpush3.bf16.msra.mxu1 %v2752_v12  ;;  %2437 = vmatpush3.bf16.msra.mxu0 %v2739_v8 }
   0xa   :  { %2429 = vmatprep.subr.bf16.mxu1 %v2666_v0  ;;  %2438 = vmatprep.subr.bf16.mxu0 %v2666_v0 }
   0xb   :  { %2203 = vmatprep.mubr.msk.f32.mxu0 %vm53_vm0, %v34_v48 }
   0xc   :  { %2221 = vmatmul.mubr.f32.vlgmr.msra.gmra.mrb[0].mxu1 %v2668_v4  ;;  %2204 = vmatmul.mubr.msk.f32.gmra.mrb[2].mxu0 %vm53_vm0, %v35_v49 }
   0xd   :  { %2431 = vmatpush3.bf16.msra.mxu1 %v2739_v8  ;;  %2231 = vmatprep.mubr.msk.f32.mxu1 %vm2667_vm1, %v2668_v4 }
   0xe   :  { %2432 = vmatprep.subr.bf16.mxu1 %v2666_v0  ;;  %2440 = vmatpush3.bf16.msra.mxu0 %v2752_v12 }
   0xf   :  { %2447 = vmatprep.subr.bf16.mxu0 %v2666_v0  ;;  %2206 = vmatprep.mubr.msk.f32.mxu0 %vm53_vm0, %v36_v50 }
  0x10   :  { %2207 = vmatmul.mubr.msk.f32.gmra.mrb[4].mxu0 %vm53_vm0, %v37_v51 }
  0x11   :  { %2434 = vmatpush3.bf16.msra.mxu1 %v2752_v12  ;;  %2209 = vmatprep.mubr.msk.f32.mxu0 %vm53_vm0, %v38_v52 }
  0x12   :  { %2441 = vmatprep.subr.bf16.mxu1 %v2666_v0 }
  0x14   :  { %2210 = vmatmul.mubr.msk.f32.gmra.mrb[6].mxu0 %vm53_vm0, %v39_v53 }
  0x15   :  { %2242 = vmatprep.mubr.msk.f32.mxu0 %vm2667_vm1, %v2668_v4 }
  0xdb   :  { %v2202_v14 = vpop.f32.mrb[0].mxu0 }
  0xdc   :  { %v144_v15 = vpop.f32.mrb[1].mxu0  ;;  %v150_v34 = vadd.f32 %v2202_v14, %v2773_v13 }
  0xdd   :  { %v145_v16 = vadd.f32 %v2773_v13, %v144_v15 }
  0xdf   :  { %v253_v17 = vpop.f32.mrb[0].mxu1  ;;  %v2205_v57 = vpop.f32.mrb[2].mxu0 }
  0xe0   :  { %v257_v18 = vadd.f32 %v253_v17, %v145_v16  ;;  %v2222_v19 = vpop.f32.mrb[1].mxu1  ;;  %v154_v58 = vpop.f32.mrb[3].mxu0 }
  0xe1   :  { %v155_v1 = vadd.f32 %v2773_v13, %v154_v58 }
  0xe2   :  { %2538 = vtanh.f32 %v257_v18  ;;  %v2048_v21 = vmul.f32 -1.442695, %v257_v18 }
  0xe3   :  { %v2819_v59 = vpop.f32.mrb[4].mxu0 }
  0xe4   :  { %2540 = vpow2.f32 %v2048_v21  ;;  %v2821_v60 = vpop.f32.mrb[5].mxu0 }
  0xe7   :  { %v2823_v61 = vpop.f32.mrb[6].mxu0 }
  0xe8   :  { %v2825_v62 = vpop.f32.mrb[7].mxu0 }
  0xec   :  { %v2539_v20 = vpop.eup %2538 }
  0xed   :  { %267 = vrot.lane.b32.xlu0 %v2539_v20, %s2669_s25 }
  0xee   :  { %v2541_v22 = vpop.eup %2540 }
  0xef   :  { %v261_v23 = vadd.f32 1.0, %v2541_v22 }
  0xf1   :  { %2542 = vrcp.f32 %v261_v23  ;;  %v160_v23 = vadd.f32 %v2205_v57, %v2773_v13 }
  0xfb   :  { %v2543_v24 = vpop.eup %2542 }
  0xfc   :  { %v265_v27 = vmul.f32 0.0, %v2543_v24 }
 0x15f   :  { %v268_v25 = vpop.permute.xlu0 %267 }
 0x160   :  { %v270_v26 = vmul.f32 %v2543_v24, %v268_v25 }
 0x162   :  { %272 = vrot.lane.b32.xlu0 %v270_v26, %s2670_s3 }
 0x1d4   :  { %v273_v28 = vpop.permute.xlu0 %272 }
 0x1d5   :  { %v275_v29 = vadd.f32 %v273_v28, %v265_v27 }
 0x1d7   :  { %2544 = vtanh.f32 %v275_v29 }
 0x1e1   :  { %v2545_v30 = vpop.eup %2544 }
 0x1e2   :  { %278 = vrot.lane.b32.xlu1 %v2545_v30, %s2669_s25 }
 0x254   :  { %v279_v31 = vpop.permute.xlu1 %278 }
 0x255   :  { %v281_v32 = vmul.f32 %v2543_v24, %v279_v31 }
 0x257   :  { %283 = vrot.lane.b32.xlu1 %v281_v32, %s2670_s3 }
 0x2c9   :  { %v284_v33 = vpop.permute.xlu1 %283 }
 0x2ca   :  { %286 = vst.msk [vmem:[#allocation2] sm:$0xff] %vm183_vm2, %v284_v33  ;;  %2232 = vmatmul.mubr.msk.f32.vlgmr.msra.gmra.mrb[2].mxu1 %vm183_vm2, %v284_v33 }
 0x2cb   :  { %2443 = vmatpush3.bf16.msra.mxu1 %v2739_v8  ;;  %2253 = vmatprep.mubr.msk.f32.mxu1 %vm2667_vm1, %v2668_v4 }
 0x2cc   :  { %2444 = vmatprep.subr.bf16.mxu1 %v2666_v0 }
 0x2cf   :  { %2446 = vmatpush3.bf16.msra.mxu1 %v2752_v12 }
 0x2d0   :  { %2453 = vmatprep.subr.bf16.mxu1 %v2666_v0 }
 0x39d   :  { %v355_v35 = vpop.f32.mrb[2].mxu1 }
 0x39e   :  { %v359_v36 = vadd.f32 %v355_v35, %v150_v34  ;;  %v2233_v37 = vpop.f32.mrb[3].mxu1 }
 0x3a0   :  { %2546 = vtanh.f32 %v359_v36  ;;  %v2050_v39 = vmul.f32 -1.442695, %v359_v36 }
 0x3a2   :  { %2548 = vpow2.f32 %v2050_v39 }
 0x3aa   :  { %v2547_v38 = vpop.eup %2546 }
 0x3ab   :  { %369 = vrot.lane.b32.xlu0 %v2547_v38, %s2669_s25 }
 0x3ac   :  { %v2549_v40 = vpop.eup %2548 }
 0x3ad   :  { %v363_v41 = vadd.f32 1.0, %v2549_v40 }
 0x3af   :  { %2550 = vrcp.f32 %v363_v41  ;;  %v165_v41 = vadd.f32 %v2773_v13, %v2821_v60  ;;  %v170_v60 = vadd.f32 %v2819_v59, %v2773_v13 }
 0x3b9   :  { %v2551_v42 = vpop.eup %2550 }
 0x3ba   :  { %v367_v45 = vmul.f32 %v2551_v42, %v275_v29 }
 0x41d   :  { %v370_v43 = vpop.permute.xlu0 %369 }
 0x41e   :  { %v372_v44 = vmul.f32 %v2551_v42, %v370_v43 }
 0x420   :  { %374 = vrot.lane.b32.xlu1 %v372_v44, %s2670_s3 }
 0x492   :  { %v375_v46 = vpop.permute.xlu1 %374 }
 0x493   :  { %v377_v47 = vadd.f32 %v375_v46, %v367_v45 }
 0x495   :  { %2552 = vtanh.f32 %v377_v47 }
 0x49f   :  { %v2553_v54 = vpop.eup %2552 }
 0x4a0   :  { %380 = vrot.lane.b32.xlu0 %v2553_v54, %s2669_s25 }
 0x512   :  { %v381_v55 = vpop.permute.xlu0 %380 }
 0x513   :  { %v383_v56 = vmul.f32 %v2551_v42, %v381_v55 }
 0x515   :  { %385 = vrot.lane.b32.xlu1 %v383_v56, %s2670_s3 }
 0x587   :  { %v386_v63 = vpop.permute.xlu1 %385 }
 0x588   :  { %388 = vst.msk [vmem:[#allocation2 + $0x8] sm:$0xff] %vm183_vm2, %v386_v63  ;;  %2243 = vmatmul.mubr.msk.f32.vlgmr.msra.gmra.mrb[8].mxu0 %vm183_vm2, %v386_v63 }
 0x589   :  { %2449 = vmatpush3.bf16.msra.mxu0 %v2739_v8  ;;  %2264 = vmatprep.mubr.msk.f32.mxu0 %vm2667_vm1, %v2668_v4 }
 0x58a   :  { %2450 = vmatprep.subr.bf16.mxu0 %v2666_v0 }
 0x58d   :  { %2452 = vmatpush3.bf16.msra.mxu0 %v2752_v12 }
 0x58e   :  { %2459 = vmatprep.subr.bf16.mxu0 %v2666_v0 }
 0x65b   :  { %v457_v2 = vpop.f32.mrb[8].mxu0 }
 0x65c   :  { %v461_v3 = vadd.f32 %v457_v2, %v155_v1  ;;  %v2244_v5 = vpop.f32.mrb[9].mxu0 }
 0x65e   :  { %2554 = vtanh.f32 %v461_v3  ;;  %v2052_v7 = vmul.f32 -1.442695, %v461_v3 }
 0x660   :  { %2556 = vpow2.f32 %v2052_v7 }
 0x668   :  { %v2555_v6 = vpop.eup %2554 }
 0x669   :  { %471 = vrot.lane.b32.xlu0 %v2555_v6, %s2669_s25 }
 0x66a   :  { %v2557_v9 = vpop.eup %2556 }
 0x66b   :  { %v465_v10 = vadd.f32 1.0, %v2557_v9 }
 0x66d   :  { %2558 = vrcp.f32 %v465_v10 }
 0x677   :  { %v2559_v11 = vpop.eup %2558 }
 0x678   :  { %v469_v16 = vmul.f32 %v2559_v11, %v377_v47 }
 0x6db   :  { %v472_v14 = vpop.permute.xlu0 %471 }
 0x6dc   :  { %v474_v15 = vmul.f32 %v2559_v11, %v472_v14  ;;  %v1009_v14 = vld [vmem:[%s3085_s4] sm:$0xff] }
 0x6de   :  { %476 = vrot.lane.b32.xlu1 %v474_v15, %s2670_s3  ;;  %v1010_v15 = vld [vmem:[%s3085_s4 + $0x8] sm:$0xff] }
 0x750   :  { %v477_v17 = vpop.permute.xlu1 %476 }
 0x751   :  { %v479_v18 = vadd.f32 %v477_v17, %v469_v16  ;;  %v2471_v16 = vpack.c.bf16 %v1010_v15, %v1009_v14 }
 0x753   :  { %2560 = vtanh.f32 %v479_v18 }
 0x75d   :  { %v2561_v19 = vpop.eup %2560 }
 0x75e   :  { %482 = vrot.lane.b32.xlu0 %v2561_v19, %s2669_s25 }
 0x7d0   :  { %v483_v20 = vpop.permute.xlu0 %482 }
 0x7d1   :  { %v485_v21 = vmul.f32 %v2559_v11, %v483_v20  ;;  %v1011_v20 = vld [vmem:[%s3085_s4 + $0x10] sm:$0xff] }
 0x7d3   :  { %487 = vrot.lane.b32.xlu1 %v485_v21, %s2670_s3  ;;  %v1012_v21 = vld [vmem:[%s3085_s4 + $0x18] sm:$0xff] }
 0x845   :  { %v488_v22 = vpop.permute.xlu1 %487 }
 0x846   :  { %490 = vst.msk [vmem:[#allocation2 + $0x10] sm:$0xff] %vm183_vm2, %v488_v22  ;;  %2254 = vmatmul.mubr.msk.f32.vlgmr.msra.gmra.mrb[4].mxu1 %vm183_vm2, %v488_v22  ;;  %v2475_v22 = vpack.c.bf16 %v1012_v21, %v1011_v20 }
 0x847   :  { %2455 = vmatpush3.bf16.msra.mxu1 %v2739_v8  ;;  %2275 = vmatprep.mubr.msk.f32.mxu1 %vm2667_vm1, %v2668_v4 }
 0x848   :  { %2456 = vmatprep.subr.bf16.mxu1 %v2666_v0 }
 0x84b   :  { %2458 = vmatpush3.bf16.msra.mxu1 %v2752_v12 }
 0x84c   :  { %2465 = vmatprep.subr.bf16.mxu1 %v2666_v0 }
 0x919   :  { %v559_v24 = vpop.f32.mrb[4].mxu1 }
 0x91a   :  { %v563_v25 = vadd.f32 %v559_v24, %v160_v23  ;;  %v2255_v26 = vpop.f32.mrb[5].mxu1  ;;  %v1001_v24 = vld [vmem:[#allocation2] sm:$0xff] }
 0x91b   :  { %v1003_v26 = vld [vmem:[#allocation2 + $0x10] sm:$0xff] }
 0x91c   :  { %2562 = vtanh.f32 %v563_v25  ;;  %v2054_v28 = vmul.f32 -1.442695, %v563_v25  ;;  %v1002_v25 = vld [vmem:[#allocation2 + $0x8] sm:$0xff] }
 0x91e   :  { %2564 = vpow2.f32 %v2054_v28 }
 0x926   :  { %v2563_v27 = vpop.eup %2562 }
 0x927   :  { %573 = vrot.lane.b32.xlu0 %v2563_v27, %s2669_s25 }
 0x928   :  { %v2565_v29 = vpop.eup %2564 }
 0x929   :  { %v567_v30 = vadd.f32 1.0, %v2565_v29 }
 0x92b   :  { %2566 = vrcp.f32 %v567_v30  ;;  %v175_v30 = vadd.f32 %v2773_v13, %v2825_v62 }
 0x935   :  { %v2567_v31 = vpop.eup %2566 }
 0x936   :  { %v571_v34 = vmul.f32 %v2567_v31, %v479_v18 }
 0x999   :  { %v574_v32 = vpop.permute.xlu0 %573 }
 0x99a   :  { %v576_v33 = vmul.f32 %v2567_v31, %v574_v32 }
 0x99c   :  { %578 = vrot.lane.b32.xlu1 %v576_v33, %s2670_s3 }
 0xa0e   :  { %v579_v35 = vpop.permute.xlu1 %578 }
 0xa0f   :  { %v581_v36 = vadd.f32 %v579_v35, %v571_v34 }
 0xa11   :  { %2568 = vtanh.f32 %v581_v36 }
 0xa1b   :  { %v2569_v37 = vpop.eup %2568 }
 0xa1c   :  { %584 = vrot.lane.b32.xlu0 %v2569_v37, %s2669_s25 }
 0xa8e   :  { %v585_v38 = vpop.permute.xlu0 %584 }
 0xa8f   :  { %v587_v39 = vmul.f32 %v2567_v31, %v585_v38 }
 0xa91   :  { %589 = vrot.lane.b32.xlu1 %v587_v39, %s2670_s3 }
 0xb03   :  { %v590_v40 = vpop.permute.xlu1 %589 }
 0xb04   :  { %592 = vst.msk [vmem:[#allocation2 + $0x18] sm:$0xff] %vm183_vm2, %v590_v40  ;;  %2265 = vmatmul.mubr.msk.f32.vlgmr.msra.gmra.mrb[10].mxu0 %vm183_vm2, %v590_v40 }
 0xb05   :  { %2461 = vmatpush3.bf16.msra.mxu0 %v2739_v8  ;;  %2286 = vmatprep.mubr.msk.f32.mxu0 %vm2667_vm1, %v2668_v4 }
 0xb06   :  { %2462 = vmatprep.subr.bf16.mxu0 %v2666_v0 }
 0xb09   :  { %2464 = vmatpush3.bf16.msra.mxu0 %v2752_v12 }
 0xb0a   :  { %2472 = vmatprep.subr.bf16.mxu0 %v2471_v16 }
 0xb0b   :  { %v1004_v27 = vld [vmem:[#allocation2 + $0x18] sm:$0xff] }
 0xbd7   :  { %v661_v42 = vpop.f32.mrb[10].mxu0 }
 0xbd8   :  { %v665_v43 = vadd.f32 %v661_v42, %v165_v41  ;;  %v2266_v44 = vpop.f32.mrb[11].mxu0 }
 0xbda   :  { %2570 = vtanh.f32 %v665_v43  ;;  %v2056_v46 = vmul.f32 -1.442695, %v665_v43 }
 0xbdc   :  { %2572 = vpow2.f32 %v2056_v46 }
 0xbe4   :  { %v2571_v45 = vpop.eup %2570 }
 0xbe5   :  { %675 = vrot.lane.b32.xlu0 %v2571_v45, %s2669_s25 }
 0xbe6   :  { %v2573_v47 = vpop.eup %2572 }
 0xbe7   :  { %v669_v48 = vadd.f32 1.0, %v2573_v47 }
 0xbe9   :  { %2574 = vrcp.f32 %v669_v48 }
 0xbf3   :  { %v2575_v49 = vpop.eup %2574 }
 0xbf4   :  { %v673_v52 = vmul.f32 %v2575_v49, %v581_v36 }
 0xc57   :  { %v676_v50 = vpop.permute.xlu0 %675 }
 0xc58   :  { %v678_v51 = vmul.f32 %v2575_v49, %v676_v50  ;;  %v1013_v50 = vld [vmem:[%s3086_s5] sm:$0xff] }
 0xc5a   :  { %680 = vrot.lane.b32.xlu1 %v678_v51, %s2670_s3  ;;  %v1014_v51 = vld [vmem:[%s3086_s5 + $0x8] sm:$0xff] }
 0xccc   :  { %v681_v53 = vpop.permute.xlu1 %680 }
 0xccd   :  { %v683_v54 = vadd.f32 %v681_v53, %v673_v52  ;;  %v2925_v52 = vpack.c.bf16 %v1014_v51, %v1013_v50  ;;  %v1015_v53 = vld [vmem:[%s3086_s5 + $0x10] sm:$0xff] }
 0xccf   :  { %2576 = vtanh.f32 %v683_v54 }
 0xcd9   :  { %v2577_v55 = vpop.eup %2576 }
 0xcda   :  { %686 = vrot.lane.b32.xlu0 %v2577_v55, %s2669_s25 }
 0xd4c   :  { %v687_v56 = vpop.permute.xlu0 %686 }
 0xd4d   :  { %v689_v57 = vmul.f32 %v2575_v49, %v687_v56 }
 0xd4f   :  { %691 = vrot.lane.b32.xlu1 %v689_v57, %s2670_s3 }
 0xdc1   :  { %v692_v58 = vpop.permute.xlu1 %691 }
 0xdc2   :  { %694 = vst.msk [vmem:[#allocation2 + $0x20] sm:$0xff] %vm183_vm2, %v692_v58  ;;  %2276 = vmatmul.mubr.msk.f32.vlgmr.msra.gmra.mrb[6].mxu1 %vm183_vm2, %v692_v58 }
 0xdc3   :  { %2467 = vmatpush3.bf16.msra.mxu1 %v2739_v8  ;;  %2297 = vmatprep.mubr.msk.f32.mxu1 %vm2667_vm1, %v2668_v4 }
 0xdc4   :  { %2468 = vmatprep.subr.bf16.mxu1 %v2666_v0 }
 0xdc7   :  { %2470 = vmatpush3.bf16.msra.mxu1 %v2752_v12 }
 0xdc8   :  { %2479 = vmatprep.subr.bf16.mxu1 %v2666_v0 }
 0xdc9   :  { %v1005_v28 = vld [vmem:[#allocation2 + $0x20] sm:$0xff] }
 0xe95   :  { %v763_v63 = vpop.f32.mrb[6].mxu1 }
 0xe96   :  { %v767_v1 = vadd.f32 %v763_v63, %v170_v60  ;;  %v2277_v2 = vpop.f32.mrb[7].mxu1  ;;  %v180_v63 = vadd.f32 %v2823_v61, %v2773_v13 }
 0xe98   :  { %2578 = vtanh.f32 %v767_v1  ;;  %v2058_v8 = vmul.f32 -1.442695, %v767_v1 }
 0xe9a   :  { %2580 = vpow2.f32 %v2058_v8  ;;  %v2961_v8 = vld [vmem:[%s3087_s6] ss:$0 sm:$0xff] }
 0xea2   :  { %v2579_v3 = vpop.eup %2578 }
 0xea3   :  { %777 = vrot.lane.b32.xlu0 %v2579_v3, %s2669_s25 }
 0xea4   :  { %v2581_v5 = vpop.eup %2580 }
 0xea5   :  { %v771_v6 = vadd.f32 1.0, %v2581_v5 }
 0xea7   :  { %2582 = vrcp.f32 %v771_v6 }
 0xeb1   :  { %v2583_v7 = vpop.eup %2582 }
 0xeb2   :  { %v775_v10 = vmul.f32 %v2583_v7, %v683_v54  ;;  %v1016_v54 = vld [vmem:[%s3086_s5 + $0x18] sm:$0xff] }
 0xeb3   :  { %v2935_v55 = vpack.c.bf16 %v1016_v54, %v1015_v53 }
 0xf15   :  { %v778_v9 = vpop.permute.xlu0 %777 }
 0xf16   :  { %v780_v12 = vmul.f32 %v2583_v7, %v778_v9 }
 0xf18   :  { %782 = vrot.lane.b32.xlu1 %v780_v12, %s2670_s3 }
 0xf8a   :  { %v783_v11 = vpop.permute.xlu1 %782 }
 0xf8b   :  { %v785_v59 = vadd.f32 %v783_v11, %v775_v10 }
 0xf8d   :  { %2584 = vtanh.f32 %v785_v59 }
 0xf97   :  { %v2585_v17 = vpop.eup %2584 }
 0xf98   :  { %788 = vrot.lane.b32.xlu0 %v2585_v17, %s2669_s25 }
0x100a   :  { %v789_v18 = vpop.permute.xlu0 %788 }
0x100b   :  { %v791_v19 = vmul.f32 %v2583_v7, %v789_v18 }
0x100d   :  { %793 = vrot.lane.b32.xlu1 %v791_v19, %s2670_s3 }
0x107f   :  { %v794_v23 = vpop.permute.xlu1 %793 }
0x1080   :  { %796 = vst.msk [vmem:[#allocation2 + $0x28] sm:$0xff] %vm183_vm2, %v794_v23  ;;  %2287 = vmatmul.mubr.msk.f32.vlgmr.msra.gmra.mrb[12].mxu0 %vm183_vm2, %v794_v23 }
0x1081   :  { %2474 = vmatpush3.bf16.msra.mxu0 %v2471_v16  ;;  %2308 = vmatprep.mubr.msk.f32.mxu0 %vm183_vm2, %v1001_v24 }
0x1082   :  { %2476 = vmatprep.subr.bf16.mxu0 %v2475_v22 }
0x1085   :  { %2478 = vmatpush3.bf16.msra.mxu0 %v2475_v22 }
0x1086   :  { %2491 = vmatprep.subr.bf16.mxu0 %v2666_v0 }
0x1087   :  { %v1006_v29 = vld [vmem:[#allocation2 + $0x28] sm:$0xff] }
0x1088   :  { %2309 = vmatmul.mubr.msk.f32.vlgmr.msra.gmra.mrb[14].mxu0 %vm183_vm2, %v1002_v25 }
0x1089   :  { %2311 = vmatprep.mubr.msk.f32.mxu0 %vm183_vm2, %v1003_v26  ;;  %2493 = vmatpush3.bf16.msra.mxu0 %v2925_v52 }
0x108a   :  { %2494 = vmatprep.subr.bf16.mxu0 %v2666_v0 }
0x108c   :  { %2312 = vmatmul.mubr.msk.f32.gmra.mrb[16].mxu0 %vm183_vm2, %v1004_v27 }
0x108d   :  { %2314 = vmatprep.mubr.msk.f32.mxu0 %vm183_vm2, %v1005_v28  ;;  %2496 = vmatpush3.bf16.msra.mxu0 %v2935_v55 }
0x108e   :  { %2503 = vmatprep.subr.bf16.mxu0 %v2666_v0 }
0x1090   :  { %2315 = vmatmul.mubr.msk.f32.gmra.mrb[18].mxu0 %vm183_vm2, %v1006_v29 }
0x1153   :  { %v865_v31 = vpop.f32.mrb[12].mxu0 }
0x1154   :  { %v869_v32 = vadd.f32 %v865_v31, %v175_v30  ;;  %v2288_v33 = vpop.f32.mrb[13].mxu0 }
0x1156   :  { %2586 = vtanh.f32 %v869_v32  ;;  %v2060_v41 = vmul.f32 -1.442695, %v869_v32 }
0x1158   :  { %2588 = vpow2.f32 %v2060_v41 }
0x115b   :  { %v2903_v34 = vpop.f32.mrb[14].mxu0 }
0x115c   :  { %v1114_v35 = vpop.f32.mrb[15].mxu0 }
0x115d   :  { %v1115_v5 = vadd.f32 %v2961_v8, %v1114_v35 }
0x115f   :  { %v2905_v36 = vpop.f32.mrb[16].mxu0 }
0x1160   :  { %v2587_v37 = vpop.eup %2586  ;;  %v2907_v38 = vpop.f32.mrb[17].mxu0 }
0x1161   :  { %879 = vrot.lane.b32.xlu0 %v2587_v37, %s2669_s25  ;;  %v1120_v37 = vadd.f32 %v2903_v34, %v2961_v8 }
0x1162   :  { %v2589_v62 = vpop.eup %2588 }
0x1163   :  { %v2910_v39 = vpop.f32.mrb[18].mxu0  ;;  %v873_v42 = vadd.f32 1.0, %v2589_v62 }
0x1164   :  { %v2912_v40 = vpop.f32.mrb[19].mxu0 }
0x1165   :  { %2590 = vrcp.f32 %v873_v42 }
0x116f   :  { %v2591_v43 = vpop.eup %2590 }
0x1170   :  { %v877_v46 = vmul.f32 %v2591_v43, %v785_v59 }
0x11d3   :  { %v880_v44 = vpop.permute.xlu0 %879 }
0x11d4   :  { %v882_v45 = vmul.f32 %v2591_v43, %v880_v44 }
0x11d6   :  { %884 = vrot.lane.b32.xlu1 %v882_v45, %s2670_s3 }
0x1248   :  { %v885_v47 = vpop.permute.xlu1 %884 }
0x1249   :  { %v2915_v48 = vadd.f32 %v885_v47, %v877_v46 }
0x124b   :  { %2592 = vtanh.f32 %v2915_v48 }
0x1255   :  { %v2593_v49 = vpop.eup %2592 }
0x1256   :  { %890 = vrot.lane.b32.xlu0 %v2593_v49, %s2669_s25 }
0x12c8   :  { %v891_v56 = vpop.permute.xlu0 %890 }
0x12c9   :  { %v893_v57 = vmul.f32 %v2591_v43, %v891_v56 }
0x12cb   :  { %895 = vrot.lane.b32.xlu1 %v893_v57, %s2670_s3 }
0x133d   :  { %v896_v58 = vpop.permute.xlu1 %895 }
0x133e   :  { %898 = vst.msk [vmem:[#allocation2 + $0x30] sm:$0xff] %vm183_vm2, %v896_v58  ;;  %2298 = vmatmul.mubr.msk.f32.vlgmr.msra.gmra.mrb[8].mxu1 %vm183_vm2, %v896_v58 }
0x133f   :  { %2481 = vmatpush3.bf16.msra.mxu1 %v2925_v52  ;;  %2328 = vmatprep.mubr.msk.f32.mxu1 %vm2667_vm1, %v2668_v4 }
0x1340   :  { %2482 = vmatprep.subr.bf16.mxu1 %v2666_v0 }
0x1343   :  { %2484 = vmatpush3.bf16.msra.mxu1 %v2935_v55 }
0x1344   :  { %2485 = vmatprep.subr.bf16.mxu1 %v2666_v0 }
0x1345   :  { %v1007_v60 = vld [vmem:[#allocation2 + $0x30] sm:$0xff] }
0x1346   :  { %2329 = vmatmul.mubr.f32.vlgmr.msra.gmra.mrb[10].mxu1 %v2668_v4  ;;  %2317 = vmatprep.mubr.msk.f32.mxu0 %vm183_vm2, %v1007_v60 }
0x1347   :  { %2487 = vmatpush3.bf16.msra.mxu1 %v2925_v52  ;;  %2339 = vmatprep.mubr.msk.f32.mxu1 %vm2667_vm1, %v2668_v4 }
0x1348   :  { %2488 = vmatprep.subr.bf16.mxu1 %v2666_v0 }
0x134b   :  { %2490 = vmatpush3.bf16.msra.mxu1 %v2935_v55 }
0x134c   :  { %2497 = vmatprep.subr.bf16.mxu1 %v2666_v0 }
0x1411   :  { %v967_v1 = vpop.f32.mrb[8].mxu1 }
0x1412   :  { %v971_v2 = vadd.f32 %v967_v1, %v180_v63  ;;  %v2299_v3 = vpop.f32.mrb[9].mxu1 }
0x1414   :  { %v2062_v20 = vmul.f32 -1.442695, %v971_v2 }
0x1419   :  { %v1219_v6 = vpop.f32.mrb[10].mxu1 }
0x141a   :  { %v1223_v7 = vadd.f32 %v1219_v6, %v1115_v5  ;;  %v2330_v9 = vpop.f32.mrb[11].mxu1 }
0x141c   :  { %2594 = vtanh.f32 %v1223_v7  ;;  %v2072_v10 = vmul.f32 -1.442695, %v1223_v7 }
0x141e   :  { %2596 = vpow2.f32 %v2072_v10 }
0x1426   :  { %v2595_v12 = vpop.eup %2594 }
0x1427   :  { %1233 = vrot.lane.b32.xlu0 %v2595_v12, %s2669_s25 }
0x1428   :  { %v2597_v13 = vpop.eup %2596 }
0x1429   :  { %v1227_v61 = vadd.f32 1.0, %v2597_v13 }
0x142b   :  { %2598 = vrcp.f32 %v1227_v61 }
0x1435   :  { %v2599_v11 = vpop.eup %2598 }
0x1436   :  { %v1231_v15 = vmul.f32 0.0, %v2599_v11 }
0x1499   :  { %v1234_v59 = vpop.permute.xlu0 %1233 }
0x149a   :  { %v1236_v14 = vmul.f32 %v2599_v11, %v1234_v59 }
0x149c   :  { %1238 = vrot.lane.b32.xlu1 %v1236_v14, %s2670_s3 }
0x150e   :  { %v1239_v16 = vpop.permute.xlu1 %1238 }
0x150f   :  { %v1241_v17 = vadd.f32 %v1239_v16, %v1231_v15 }
0x1511   :  { %2600 = vtanh.f32 %v1241_v17 }
0x1512   :  { %2602 = vtanh.f32 %v971_v2  ;;  %v1125_v2 = vadd.f32 %v2961_v8, %v2907_v38 }
0x1513   :  { %2604 = vpow2.f32 %v2062_v20 }
0x151b   :  { %v2601_v18 = vpop.eup %2600 }
0x151c   :  { %1244 = vrot.lane.b32.xlu0 %v2601_v18, %s2669_s25  ;;  %v2603_v19 = vpop.eup %2602 }
0x151d   :  { %v2605_v21 = vpop.eup %2604 }
0x151e   :  { %v975_v22 = vadd.f32 1.0, %v2605_v21 }
0x1520   :  { %981 = vrot.lane.b32.xlu0 %v2603_v19, %s2669_s25  ;;  %2606 = vrcp.f32 %v975_v22  ;;  %v1130_v19 = vadd.f32 %v2905_v36, %v2961_v8 }
0x152a   :  { %v2607_v25 = vpop.eup %2606 }
0x152b   :  { %v979_v29 = vmul.f32 %v2607_v25, %v2915_v48 }
0x158e   :  { %v1245_v23 = vpop.permute.xlu0 %1244 }
0x158f   :  { %v1247_v24 = vmul.f32 %v2599_v11, %v1245_v23 }
0x1591   :  { %1249 = vrot.lane.b32.xlu1 %v1247_v24, %s2670_s3 }
0x1592   :  { %v982_v26 = vpop.permute.xlu0 %981 }
0x1593   :  { %v984_v27 = vmul.f32 %v2607_v25, %v982_v26 }
0x1595   :  { %986 = vrot.lane.b32.xlu0 %v984_v27, %s2670_s3 }
0x1603   :  { %v1250_v28 = vpop.permute.xlu1 %1249 }
0x1604   :  { %2340 = vmatmul.mubr.msk.f32.vlgmr.msra.gmra.mrb[12].mxu1 %vm183_vm2, %v1250_v28 }
0x1605   :  { %2499 = vmatpush3.bf16.msra.mxu1 %v2925_v52  ;;  %2361 = vmatprep.mubr.msk.f32.mxu1 %vm2667_vm1, %v2668_v4 }
0x1606   :  { %2500 = vmatprep.subr.bf16.mxu1 %v2666_v0 }
0x1607   :  { %v987_v30 = vpop.permute.xlu0 %986 }
0x1608   :  { %v989_v31 = vadd.f32 %v987_v30, %v979_v29 }
0x1609   :  { %2502 = vmatpush3.bf16.msra.mxu1 %v2935_v55 }
0x160a   :  { %2608 = vtanh.f32 %v989_v31  ;;  %2509 = vmatprep.subr.bf16.mxu1 %v2666_v0 }
0x1614   :  { %v2609_v32 = vpop.eup %2608 }
0x1615   :  { %992 = vrot.lane.b32.xlu0 %v2609_v32, %s2669_s25 }
0x1687   :  { %v993_v33 = vpop.permute.xlu0 %992 }
0x1688   :  { %v995_v35 = vmul.f32 %v2607_v25, %v993_v33 }
0x168a   :  { %997 = vrot.lane.b32.xlu0 %v995_v35, %s2670_s3 }
0x16d7   :  { %v1319_v41 = vpop.f32.mrb[12].mxu1 }
0x16d8   :  { %v1323_v62 = vadd.f32 %v1319_v41, %v1120_v37  ;;  %v2341_v42 = vpop.f32.mrb[13].mxu1  ;;  %v1135_v41 = vadd.f32 %v2961_v8, %v2912_v40 }
0x16da   :  { %2610 = vtanh.f32 %v1323_v62  ;;  %v2074_v46 = vmul.f32 -1.442695, %v1323_v62 }
0x16dc   :  { %2612 = vpow2.f32 %v2074_v46 }
0x16e4   :  { %v2611_v43 = vpop.eup %2610 }
0x16e5   :  { %1333 = vrot.lane.b32.xlu1 %v2611_v43, %s2669_s25 }
0x16e6   :  { %v2613_v47 = vpop.eup %2612 }
0x16e7   :  { %v1327_v34 = vadd.f32 1.0, %v2613_v47 }
0x16e9   :  { %2614 = vrcp.f32 %v1327_v34 }
0x16f3   :  { %v2615_v48 = vpop.eup %2614 }
0x16f4   :  { %v1331_v51 = vmul.f32 %v2615_v48, %v1241_v17 }
0x16fc   :  { %v998_v44 = vpop.permute.xlu0 %997 }
0x16fd   :  { %1000 = vst.msk [vmem:[#allocation2 + $0x38] sm:$0xff] %vm183_vm2, %v998_v44 }
0x1704   :  { %v1008_v45 = vld [vmem:[#allocation2 + $0x38] sm:$0xff] }
0x1705   :  { %2318 = vmatmul.mubr.msk.f32.gmra.mrb[20].mxu0 %vm183_vm2, %v1008_v45 }
0x1706   :  { %2350 = vmatprep.mubr.msk.f32.mxu0 %vm2667_vm1, %v2668_v4 }
0x1757   :  { %v1334_v49 = vpop.permute.xlu1 %1333 }
0x1758   :  { %v1336_v50 = vmul.f32 %v2615_v48, %v1334_v49 }
0x175a   :  { %1338 = vrot.lane.b32.xlu1 %v1336_v50, %s2670_s3 }
0x17cc   :  { %v1339_v53 = vpop.permute.xlu1 %1338 }
0x17cd   :  { %v1341_v54 = vadd.f32 %v1339_v53, %v1331_v51 }
0x17cf   :  { %2616 = vtanh.f32 %v1341_v54 }
0x17d8   :  { %v2988_v56 = vpop.f32.mrb[20].mxu0 }
0x17d9   :  { %v2617_v57 = vpop.eup %2616  ;;  %v2990_v58 = vpop.f32.mrb[21].mxu0 }
0x17da   :  { %1344 = vrot.lane.b32.xlu1 %v2617_v57, %s2669_s25 }
0x184c   :  { %v1345_v60 = vpop.permute.xlu1 %1344 }
0x184d   :  { %v1347_v63 = vmul.f32 %v2615_v48, %v1345_v60 }
0x184f   :  { %1349 = vrot.lane.b32.xlu1 %v1347_v63, %s2670_s3  ;;  %v1140_v63 = vadd.f32 %v2910_v39, %v2961_v8 }
0x18c1   :  { %v1350_v1 = vpop.permute.xlu1 %1349 }
0x18c2   :  { %2351 = vmatmul.mubr.msk.f32.vlgmr.msra.gmra.mrb[22].mxu0 %vm183_vm2, %v1350_v1 }
0x18c3   :  { %2505 = vmatpush3.bf16.msra.mxu0 %v2925_v52  ;;  %2372 = vmatprep.mubr.msk.f32.mxu0 %vm2667_vm1, %v2668_v4 }
0x18c4   :  { %2506 = vmatprep.subr.bf16.mxu0 %v2666_v0 }
0x18c7   :  { %2508 = vmatpush3.bf16.msra.mxu0 %v2935_v55 }
0x18c8   :  { %2515 = vmatprep.subr.bf16.mxu0 %v2666_v0 }
0x1995   :  { %v1419_v3 = vpop.f32.mrb[22].mxu0 }
0x1996   :  { %v1423_v5 = vadd.f32 %v1419_v3, %v1125_v2  ;;  %v2352_v6 = vpop.f32.mrb[23].mxu0 }
0x1998   :  { %2618 = vtanh.f32 %v1423_v5  ;;  %v2076_v9 = vmul.f32 -1.442695, %v1423_v5 }
0x199a   :  { %2620 = vpow2.f32 %v2076_v9 }
0x19a2   :  { %v2619_v7 = vpop.eup %2618 }
0x19a3   :  { %1433 = vrot.lane.b32.xlu0 %v2619_v7, %s2669_s25 }
0x19a4   :  { %v2621_v12 = vpop.eup %2620 }
0x19a5   :  { %v1427_v10 = vadd.f32 1.0, %v2621_v12 }
0x19a7   :  { %2622 = vrcp.f32 %v1427_v10 }
0x19b1   :  { %v2623_v13 = vpop.eup %2622 }
0x19b2   :  { %v1431_v59 = vmul.f32 %v2623_v13, %v1341_v54 }
0x1a15   :  { %v1434_v61 = vpop.permute.xlu0 %1433 }
0x1a16   :  { %v1436_v11 = vmul.f32 %v2623_v13, %v1434_v61 }
0x1a18   :  { %1438 = vrot.lane.b32.xlu1 %v1436_v11, %s2670_s3 }
0x1a8a   :  { %v1439_v14 = vpop.permute.xlu1 %1438 }
0x1a8b   :  { %v1441_v38 = vadd.f32 %v1439_v14, %v1431_v59 }
0x1a8d   :  { %2624 = vtanh.f32 %v1441_v38 }
0x1a97   :  { %v2625_v15 = vpop.eup %2624 }
0x1a98   :  { %1444 = vrot.lane.b32.xlu0 %v2625_v15, %s2669_s25 }
0x1b0a   :  { %v1445_v16 = vpop.permute.xlu0 %1444 }
0x1b0b   :  { %v1447_v17 = vmul.f32 %v2623_v13, %v1445_v16 }
0x1b0d   :  { %1449 = vrot.lane.b32.xlu1 %v1447_v17, %s2670_s3 }
0x1b7f   :  { %v1450_v18 = vpop.permute.xlu1 %1449 }
0x1b80   :  { %2362 = vmatmul.mubr.msk.f32.vlgmr.msra.gmra.mrb[14].mxu1 %vm183_vm2, %v1450_v18 }
0x1b81   :  { %2511 = vmatpush3.bf16.msra.mxu1 %v2925_v52  ;;  %2383 = vmatprep.mubr.msk.f32.mxu1 %vm2667_vm1, %v2668_v4 }
0x1b82   :  { %2512 = vmatprep.subr.bf16.mxu1 %v2666_v0 }
0x1b85   :  { %2514 = vmatpush3.bf16.msra.mxu1 %v2935_v55 }
0x1b86   :  { %2521 = vmatprep.subr.bf16.mxu1 %v2666_v0 }
0x1c53   :  { %v1519_v20 = vpop.f32.mrb[14].mxu1 }
0x1c54   :  { %v1523_v21 = vadd.f32 %v1519_v20, %v1130_v19  ;;  %v2363_v22 = vpop.f32.mrb[15].mxu1 }
0x1c56   :  { %2626 = vtanh.f32 %v1523_v21  ;;  %v2078_v24 = vmul.f32 -1.442695, %v1523_v21 }
0x1c58   :  { %2628 = vpow2.f32 %v2078_v24 }
0x1c60   :  { %v2627_v23 = vpop.eup %2626 }
0x1c61   :  { %1533 = vrot.lane.b32.xlu0 %v2627_v23, %s2669_s25 }
0x1c62   :  { %v2629_v25 = vpop.eup %2628 }
0x1c63   :  { %v1527_v26 = vadd.f32 1.0, %v2629_v25 }
0x1c65   :  { %2630 = vrcp.f32 %v1527_v26 }
0x1c6f   :  { %v2631_v27 = vpop.eup %2630 }
0x1c70   :  { %v1531_v30 = vmul.f32 %v2631_v27, %v1441_v38  ;;  %v1145_v38 = vadd.f32 %v2961_v8, %v2990_v58 }
0x1cd3   :  { %v1534_v28 = vpop.permute.xlu0 %1533 }
0x1cd4   :  { %v1536_v29 = vmul.f32 %v2631_v27, %v1534_v28 }
0x1cd6   :  { %1538 = vrot.lane.b32.xlu1 %v1536_v29, %s2670_s3 }
0x1d48   :  { %v1539_v31 = vpop.permute.xlu1 %1538 }
0x1d49   :  { %v1541_v36 = vadd.f32 %v1539_v31, %v1531_v30  ;;  %v1150_v30 = vadd.f32 %v2988_v56, %v2961_v8  ;;  %v1948_v56 = vld [vmem:[%s3088_s7] sm:$0xff] }
0x1d4b   :  { %2632 = vtanh.f32 %v1541_v36 }
0x1d55   :  { %v2633_v32 = vpop.eup %2632 }
0x1d56   :  { %1544 = vrot.lane.b32.xlu0 %v2633_v32, %s2669_s25 }
0x1dc8   :  { %v1545_v33 = vpop.permute.xlu0 %1544 }
0x1dc9   :  { %v1547_v35 = vmul.f32 %v2631_v27, %v1545_v33 }
0x1dcb   :  { %1549 = vrot.lane.b32.xlu1 %v1547_v35, %s2670_s3 }
0x1e3d   :  { %v1550_v37 = vpop.permute.xlu1 %1549 }
0x1e3e   :  { %2373 = vmatmul.mubr.msk.f32.vlgmr.msra.gmra.mrb[24].mxu0 %vm183_vm2, %v1550_v37 }
0x1e3f   :  { %2517 = vmatpush3.bf16.msra.mxu0 %v2925_v52  ;;  %2394 = vmatprep.mubr.msk.f32.mxu0 %vm2667_vm1, %v2668_v4 }
0x1e40   :  { %2518 = vmatprep.subr.bf16.mxu0 %v2666_v0 }
0x1e43   :  { %2520 = vmatpush3.bf16.msra.mxu0 %v2935_v55 }
0x1e44   :  { %2527 = vmatprep.subr.bf16.mxu0 %v2666_v0 }
0x1f11   :  { %v1619_v62 = vpop.f32.mrb[24].mxu0 }
0x1f12   :  { %v1623_v42 = vadd.f32 %v1619_v62, %v1135_v41  ;;  %v2374_v43 = vpop.f32.mrb[25].mxu0 }
0x1f14   :  { %2634 = vtanh.f32 %v1623_v42  ;;  %v2080_v45 = vmul.f32 -1.442695, %v1623_v42 }
0x1f16   :  { %2636 = vpow2.f32 %v2080_v45 }
0x1f1e   :  { %v2635_v44 = vpop.eup %2634 }
0x1f1f   :  { %1633 = vrot.lane.b32.xlu0 %v2635_v44, %s2669_s25 }
0x1f20   :  { %v2637_v46 = vpop.eup %2636 }
0x1f21   :  { %v1627_v47 = vadd.f32 1.0, %v2637_v46  ;;  %v1949_v46 = vld [vmem:[%s3088_s7 + $0x8] sm:$0xff] }
0x1f23   :  { %2638 = vrcp.f32 %v1627_v47  ;;  %v1950_v47 = vld [vmem:[%s3088_s7 + $0x10] sm:$0xff] }
0x1f2d   :  { %v2639_v34 = vpop.eup %2638 }
0x1f2e   :  { %v1631_v50 = vmul.f32 %v2639_v34, %v1541_v36 }
0x1f91   :  { %v1634_v48 = vpop.permute.xlu0 %1633 }
0x1f92   :  { %v1636_v49 = vmul.f32 %v2639_v34, %v1634_v48  ;;  %v1951_v48 = vld [vmem:[%s3088_s7 + $0x18] sm:$0xff] }
0x1f94   :  { %1638 = vrot.lane.b32.xlu1 %v1636_v49, %s2670_s3  ;;  %v2531_v49 = vpack.c.bf16 %v1951_v48, %v1950_v47 }
0x2006   :  { %v1639_v51 = vpop.permute.xlu1 %1638 }
0x2007   :  { %v1641_v40 = vadd.f32 %v1639_v51, %v1631_v50 }
0x2009   :  { %2640 = vtanh.f32 %v1641_v40 }
0x2013   :  { %v2641_v53 = vpop.eup %2640 }
0x2014   :  { %1644 = vrot.lane.b32.xlu0 %v2641_v53, %s2669_s25 }
0x2086   :  { %v1645_v54 = vpop.permute.xlu0 %1644 }
0x2087   :  { %v1647_v57 = vmul.f32 %v2639_v34, %v1645_v54  ;;  %v2528_v34 = vpack.c.bf16 %v1949_v46, %v1948_v56  ;;  %v2087_v54 = vld [vmem:[%s3089_s8] ss:$0 sm:$0xff] }
0x2089   :  { %1649 = vrot.lane.b32.xlu1 %v1647_v57, %s2670_s3 }
0x20fb   :  { %v1650_v60 = vpop.permute.xlu1 %1649 }
0x20fc   :  { %2384 = vmatmul.mubr.msk.f32.vlgmr.msra.gmra.mrb[16].mxu1 %vm183_vm2, %v1650_v60 }
0x20fd   :  { %2523 = vmatpush3.bf16.msra.mxu1 %v2925_v52  ;;  %2405 = vmatprep.mubr.msk.f32.mxu1 %vm2667_vm1, %v2668_v4 }
0x20fe   :  { %2524 = vmatprep.subr.bf16.mxu1 %v2666_v0 }
0x2101   :  { %2526 = vmatpush3.bf16.msra.mxu1 %v2935_v55 }
0x21cf   :  { %v1719_v1 = vpop.f32.mrb[16].mxu1 }
0x21d0   :  { %v1723_v2 = vadd.f32 %v1719_v1, %v1140_v63  ;;  %v2385_v3 = vpop.f32.mrb[17].mxu1 }
0x21d2   :  { %2642 = vtanh.f32 %v1723_v2  ;;  %v2082_v6 = vmul.f32 -1.442695, %v1723_v2 }
0x21d4   :  { %2644 = vpow2.f32 %v2082_v6 }
0x21dc   :  { %v2643_v5 = vpop.eup %2642 }
0x21dd   :  { %1733 = vrot.lane.b32.xlu0 %v2643_v5, %s2669_s25 }
0x21de   :  { %v2645_v52 = vpop.eup %2644 }
0x21df   :  { %v1727_v7 = vadd.f32 1.0, %v2645_v52 }
0x21e1   :  { %2646 = vrcp.f32 %v1727_v7 }
0x21eb   :  { %v2647_v9 = vpop.eup %2646 }
0x21ec   :  { %v1731_v55 = vmul.f32 %v2647_v9, %v1641_v40 }
0x224f   :  { %v1734_v12 = vpop.permute.xlu0 %1733 }
0x2250   :  { %v1736_v10 = vmul.f32 %v2647_v9, %v1734_v12 }
0x2252   :  { %1738 = vrot.lane.b32.xlu1 %v1736_v10, %s2670_s3 }
0x22c4   :  { %v1739_v13 = vpop.permute.xlu1 %1738 }
0x22c5   :  { %v1741_v39 = vadd.f32 %v1739_v13, %v1731_v55 }
0x22c7   :  { %2648 = vtanh.f32 %v1741_v39 }
0x22d1   :  { %v2649_v61 = vpop.eup %2648 }
0x22d2   :  { %1744 = vrot.lane.b32.xlu0 %v2649_v61, %s2669_s25 }
0x2344   :  { %v1745_v11 = vpop.permute.xlu0 %1744 }
0x2345   :  { %v1747_v59 = vmul.f32 %v2647_v9, %v1745_v11 }
0x2347   :  { %1749 = vrot.lane.b32.xlu1 %v1747_v59, %s2670_s3 }
0x23b9   :  { %v1750_v14 = vpop.permute.xlu1 %1749 }
0x23ba   :  { %2395 = vmatmul.mubr.msk.f32.vlgmr.msra.gmra.mrb[26].mxu0 %vm183_vm2, %v1750_v14 }
0x23bb   :  { %2416 = vmatprep.mubr.msk.f32.mxu0 %vm2667_vm1, %v2668_v4  ;;  %2529 = vmatpush3.bf16.msra.mxu0 %v2528_v34 }
0x23bc   :  { %2530 = vmatprep.subr.bf16.mxu0 %v2666_v0 }
0x23bf   :  { %2532 = vmatpush3.bf16.msra.mxu0 %v2531_v49 }
0x248d   :  { %v1819_v15 = vpop.f32.mrb[26].mxu0 }
0x248e   :  { %v1823_v16 = vadd.f32 %v1819_v15, %v1145_v38  ;;  %v2396_v17 = vpop.f32.mrb[27].mxu0 }
0x2490   :  { %2650 = vtanh.f32 %v1823_v16  ;;  %v2084_v19 = vmul.f32 -1.442695, %v1823_v16 }
0x2492   :  { %2652 = vpow2.f32 %v2084_v19 }
0x249a   :  { %v2651_v18 = vpop.eup %2650 }
0x249b   :  { %1833 = vrot.lane.b32.xlu0 %v2651_v18, %s2669_s25 }
0x249c   :  { %v2653_v20 = vpop.eup %2652 }
0x249d   :  { %v1827_v21 = vadd.f32 1.0, %v2653_v20 }
0x249f   :  { %2654 = vrcp.f32 %v1827_v21 }
0x24a9   :  { %v2655_v22 = vpop.eup %2654 }
0x24aa   :  { %v1831_v4 = vmul.f32 %v2655_v22, %v1741_v39 }
0x250d   :  { %v1834_v23 = vpop.permute.xlu0 %1833 }
0x250e   :  { %v1836_v24 = vmul.f32 %v2655_v22, %v1834_v23 }
0x2510   :  { %1838 = vrot.lane.b32.xlu1 %v1836_v24, %s2670_s3 }
0x2582   :  { %v1839_v25 = vpop.permute.xlu1 %1838 }
0x2583   :  { %v1841_v58 = vadd.f32 %v1839_v25, %v1831_v4 }
0x2585   :  { %2656 = vtanh.f32 %v1841_v58 }
0x258f   :  { %v2657_v26 = vpop.eup %2656 }
0x2590   :  { %1844 = vrot.lane.b32.xlu0 %v2657_v26, %s2669_s25 }
0x2602   :  { %v1845_v27 = vpop.permute.xlu0 %1844 }
0x2603   :  { %v1847_v28 = vmul.f32 %v2655_v22, %v1845_v27 }
0x2605   :  { %1849 = vrot.lane.b32.xlu1 %v1847_v28, %s2670_s3 }
0x2677   :  { %v1850_v29 = vpop.permute.xlu1 %1849 }
0x2678   :  { %2406 = vmatmul.mubr.msk.f32.vlgmr.msra.gmra.mrb[18].mxu1 %vm183_vm2, %v1850_v29 }
0x274b   :  { %v1919_v31 = vpop.f32.mrb[18].mxu1 }
0x274c   :  { %v1923_v36 = vadd.f32 %v1919_v31, %v1150_v30  ;;  %v2407_v32 = vpop.f32.mrb[19].mxu1 }
0x274e   :  { %2658 = vtanh.f32 %v1923_v36  ;;  %v2086_v35 = vmul.f32 -1.442695, %v1923_v36 }
0x2750   :  { %2660 = vpow2.f32 %v2086_v35 }
0x2758   :  { %v2659_v33 = vpop.eup %2658 }
0x2759   :  { %1933 = vrot.lane.b32.xlu0 %v2659_v33, %s2669_s25 }
0x275a   :  { %v2661_v37 = vpop.eup %2660 }
0x275b   :  { %v1927_v41 = vadd.f32 1.0, %v2661_v37 }
0x275d   :  { %2662 = vrcp.f32 %v1927_v41 }
0x2767   :  { %v2663_v62 = vpop.eup %2662 }
0x2768   :  { %v1931_v44 = vmul.f32 %v2663_v62, %v1841_v58 }
0x27cb   :  { %v1934_v42 = vpop.permute.xlu0 %1933 }
0x27cc   :  { %v1936_v43 = vmul.f32 %v2663_v62, %v1934_v42 }
0x27ce   :  { %1938 = vrot.lane.b32.xlu1 %v1936_v43, %s2670_s3 }
0x2840   :  { %v1939_v45 = vpop.permute.xlu1 %1938 }
0x2841   :  { %v1941_v8 = vadd.f32 %v1939_v45, %v1931_v44 }
0x2843   :  { %2664 = vtanh.f32 %v1941_v8 }
0x284d   :  { %v2665_v50 = vpop.eup %2664 }
0x284e   :  { %1944 = vrot.lane.b32.xlu0 %v2665_v50, %s2669_s25 }
0x28c0   :  { %v1945_v51 = vpop.permute.xlu0 %1944 }
0x28c1   :  { %v1947_v40 = vmul.f32 %v2663_v62, %v1945_v51 }
0x28c3   :  { %1960 = vrot.lane.b32.xlu1 %v1947_v40, %s2670_s3 }
0x2935   :  { %v1961_v53 = vpop.permute.xlu1 %1960 }
0x2936   :  { %2417 = vmatmul.mubr.msk.f32.vlgmr.msra.gmra.mrb[28].mxu0 %vm183_vm2, %v1961_v53 }
0x2a09   :  { %v2030_v57 = vpop.f32.mrb[28].mxu0 }
0x2a0a   :  { %v2031_v60 = vadd.f32 %v2087_v54, %v2030_v57  ;;  %v2418_v63 = vpop.f32.mrb[29].mxu0 }
0x2a0c   :  { %2034 = vst [vmem:[%s3090_s9] sm:$0xff] %v2031_v60 }

</bundles_post_ra>
